<compile_context>
chip_gen: v7x
topology: tpu7x:2x2x1
jax: 0.10.0
libtpu: 0.0.40
codegen_flags: <defaults>
</compile_context>

<pallas_src>
import math

import jax
import jax.numpy as jnp
from jax.experimental import pallas as pl
from jax.experimental.pallas import tpu as pltpu

d_model = 512
d_ff = 1024


def _round_up(x: int, m: int) -> int:
    return ((x + m - 1) // m) * m


def _ffn_kernel(x_ref, w1_ref, b1_ref, w2_ref, b2_ref, o_ref, h_ref):
    # x_ref : [tm, d_model]   f32  (VMEM, tiled over M)
    # w1_ref: [d_model, d_ff] bf16 (VMEM, resident across the whole grid)
    # b1_ref: [1, d_ff]       f32  (VMEM, resident)
    # w2_ref: [d_ff, d_model] bf16 (VMEM, resident)
    # b2_ref: [1, d_model]    f32  (VMEM, resident)
    # o_ref : [tm, d_model]   f32  (VMEM, tiled over M)
    # h_ref : [tm, d_ff]      f32  (VMEM scratch for the intermediate)
    x = x_ref[...].astype(jnp.bfloat16)

    # First GEMM on the MXU (bf16 operands, f32 accumulation), bias + ReLU in f32.
    h = jnp.dot(x, w1_ref[...], preferred_element_type=jnp.float32)
    h_ref[...] = jnp.maximum(h + b1_ref[...], 0.0)

    # Second GEMM, again bf16 operands / f32 accumulation.
    y = jnp.dot(h_ref[...].astype(jnp.bfloat16), w2_ref[...],
                preferred_element_type=jnp.float32) + b2_ref[...]
    o_ref[...] = y.astype(o_ref.dtype)


def feed_forward(x, w1, b1, w2, b2, *, tm: int = 512):
    """x: [batch, seq, d_model] f32 -> [batch, seq, d_model] f32.

    w1: [d_model, d_ff] bf16, w2: [d_ff, d_model] bf16 (pre-transposed vs.
    torch.nn.Linear), b1: [1, d_ff] f32, b2: [1, d_model] f32.
    """
    batch, seq, dm = x.shape
    dff = w1.shape[1]
    m = batch * seq
    x2d = x.reshape(m, dm)

    # Tile size: multiple of 8 (f32 sublane), never larger than needed.
    tm = min(tm, _round_up(m, 8))
    m_pad = _round_up(m, tm)
    if m_pad != m:
        x2d = jnp.pad(x2d, ((0, m_pad - m), (0, 0)))

    grid = (m_pad // tm,)

    out = pl.pallas_call(
        _ffn_kernel,
        out_shape=jax.ShapeDtypeStruct((m_pad, dm), x.dtype),
        grid_spec=pltpu.PrefetchScalarGridSpec(
            num_scalar_prefetch=0,
            grid=grid,
            in_specs=[
                # Activations: tiled over M, pipelined.
                pl.BlockSpec((tm, dm), lambda i: (i, 0)),
                # Weights / biases: constant block index -> fetched once, resident.
                pl.BlockSpec((dm, dff), lambda i: (0, 0)),
                pl.BlockSpec((1, dff), lambda i: (0, 0)),
                pl.BlockSpec((dff, dm), lambda i: (0, 0)),
                pl.BlockSpec((1, dm), lambda i: (0, 0)),
            ],
            out_specs=pl.BlockSpec((tm, dm), lambda i: (i, 0)),
            scratch_shapes=[pltpu.VMEM((tm, dff), jnp.float32)],
        ),
        compiler_params=pltpu.CompilerParams(
            # Each M tile is independent -> parallel (2 TCs on v7x).
            dimension_semantics=("parallel",),
            # Working set @ tm=512 (f32 act tiles double-buffered, bf16 weights,
            # f32 scratch) is ~10-12 MiB; 48 MiB leaves headroom on every gen
            # and stays under v7x's 64 MiB physical VMEM.
            vmem_limit_bytes=48 * 1024 * 1024,
        ),
    )(x2d, w1, b1, w2, b2)

    if m_pad != m:
        out = out[:m]
    return out.reshape(batch, seq, dm)


def init_params(key, dm, dff):
    """Deterministic init mirroring torch.nn.Linear's uniform(-1/sqrt(fan_in), ...).

    Weights are stored pre-transposed vs. torch (torch Linear weight is [out, in])
    and in bf16 (MXU operand dtype); biases stay f32.
    """
    k1, k2, k3, k4 = jax.random.split(key, 4)
    bound1 = 1.0 / math.sqrt(dm)
    bound2 = 1.0 / math.sqrt(dff)
    w1 = jax.random.uniform(k1, (dm, dff), jnp.float32, -bound1, bound1).astype(jnp.bfloat16)
    b1 = jax.random.uniform(k2, (1, dff), jnp.float32, -bound1, bound1)
    w2 = jax.random.uniform(k3, (dff, dm), jnp.float32, -bound2, bound2).astype(jnp.bfloat16)
    b2 = jax.random.uniform(k4, (1, dm), jnp.float32, -bound2, bound2)
    return w1, b1, w2, b2


if __name__ == "__main__":
    key = jax.random.PRNGKey(0)
    kx, kp = jax.random.split(key)

    batch, seq = 2, 8
    x = jax.random.normal(kx, (batch, seq, d_model), jnp.float32)
    w1, b1, w2, b2 = init_params(kp, d_model, d_ff)

    y = feed_forward(x, w1, b1, w2, b2)
    y = jax.block_until_ready(y)
    assert y.shape == (batch, seq, d_model)

    # Pure-JAX reference with the same bf16-operand / f32-accumulate semantics.
    x2d = x.reshape(-1, d_model)
    h_ref = jnp.dot(x2d.astype(jnp.bfloat16), w1,
                    preferred_element_type=jnp.float32) + b1
    h_ref = jnp.maximum(h_ref, 0.0)
    ref_bf16 = jnp.dot(h_ref.astype(jnp.bfloat16), w2,
                       preferred_element_type=jnp.float32) + b2
    ref_bf16 = ref_bf16.reshape(batch, seq, d_model)
    assert jnp.allclose(y, ref_bf16, atol=2e-2, rtol=2e-2)

    # Full-f32 reference (PyTorch semantics) with tolerance loosened for bf16 operands.
    ref_f32 = jnp.maximum(x2d @ w1.astype(jnp.float32) + b1, 0.0) @ w2.astype(jnp.float32) + b2
    ref_f32 = ref_f32.reshape(batch, seq, d_model)
    assert jnp.allclose(y, ref_f32, atol=6e-2, rtol=6e-2)

    print("KERNEL_OK")
</pallas_src>

<mosaic_0001>
module attributes {stable_mosaic.version = 11 : i64} {
  func.func @_ffn_kernel(%arg0: i32, %arg1: memref<16x512xf32, #tpu.memory_space<vmem>>, %arg2: memref<512x1024xbf16, #tpu.memory_space<vmem>>, %arg3: memref<1x1024xf32, #tpu.memory_space<vmem>>, %arg4: memref<1024x512xbf16, #tpu.memory_space<vmem>>, %arg5: memref<1x512xf32, #tpu.memory_space<vmem>>, %arg6: memref<16x512xf32, #tpu.memory_space<vmem>>, %arg7: memref<16x1024xf32, #tpu.memory_space<vmem>>) attributes {dimension_semantics = [#tpu.dimension_semantics<parallel>], iteration_bounds = array<i64: 1>, scalar_prefetch = 0 : i64, scratch_operands = 1 : i64, tpu.core_type = #tpu.core_type<tc>, window_params = [{transform_indices = @transform_0, window_bounds = array<i64: 16, 512>}, {pipeline_mode = #tpu.pipeline_mode<synchronous>, transform_indices = @transform_1, window_bounds = array<i64: 512, 1024>}, {pipeline_mode = #tpu.pipeline_mode<synchronous>, transform_indices = @transform_2, window_bounds = array<i64: 1, 1024>}, {pipeline_mode = #tpu.pipeline_mode<synchronous>, transform_indices = @transform_3, window_bounds = array<i64: 1024, 512>}, {pipeline_mode = #tpu.pipeline_mode<synchronous>, transform_indices = @transform_4, window_bounds = array<i64: 1, 512>}, {transform_indices = @transform_5, window_bounds = array<i64: 16, 512>}]} {
    %c0 = arith.constant 0 : index
    %c0_0 = arith.constant 0 : index
    %0 = vector.load %arg1[%c0, %c0_0] : memref<16x512xf32, #tpu.memory_space<vmem>>, vector<16x512xf32>
    %1 = arith.truncf %0 : vector<16x512xf32> to vector<16x512xbf16>
    %c0_1 = arith.constant 0 : index
    %c0_2 = arith.constant 0 : index
    %2 = vector.load %arg2[%c0_1, %c0_2] : memref<512x1024xbf16, #tpu.memory_space<vmem>>, vector<512x1024xbf16>
    %cst = arith.constant dense<0.000000e+00> : vector<16x1024xf32>
    %3 = tpu.matmul %1, %2, %cst {dimension_numbers = #tpu.dot_dimension_numbers<[1], [0], [0], [1], [0, 0, 1, 1], [], []>} : vector<16x512xbf16>, vector<512x1024xbf16>, vector<16x1024xf32> -> vector<16x1024xf32>
    %c0_3 = arith.constant 0 : index
    %c0_4 = arith.constant 0 : index
    %4 = vector.load %arg3[%c0_3, %c0_4] : memref<1x1024xf32, #tpu.memory_space<vmem>>, vector<1x1024xf32>
    %5 = vector.broadcast %4 : vector<1x1024xf32> to vector<16x1024xf32>
    %6 = arith.addf %3, %5 : vector<16x1024xf32>
    %cst_5 = arith.constant 0.000000e+00 : f32
    %7 = vector.broadcast %cst_5 : f32 to vector<16x1024xf32>
    %8 = arith.maximumf %6, %7 : vector<16x1024xf32>
    %c0_6 = arith.constant 0 : index
    %c0_7 = arith.constant 0 : index
    %9 = vector.load %arg7[%c0_6, %c0_7] : memref<16x1024xf32, #tpu.memory_space<vmem>>, vector<16x1024xf32>
    tpu.vector_store %arg7[%c0_6, %c0_7], %8 {strides = array<i32>} : memref<16x1024xf32, #tpu.memory_space<vmem>>, vector<16x1024xf32>,
    %c0_8 = arith.constant 0 : index
    %c0_9 = arith.constant 0 : index
    %10 = vector.load %arg7[%c0_8, %c0_9] : memref<16x1024xf32, #tpu.memory_space<vmem>>, vector<16x1024xf32>
    %11 = arith.truncf %10 : vector<16x1024xf32> to vector<16x1024xbf16>
    %c0_10 = arith.constant 0 : index
    %c0_11 = arith.constant 0 : index
    %12 = vector.load %arg4[%c0_10, %c0_11] : memref<1024x512xbf16, #tpu.memory_space<vmem>>, vector<1024x512xbf16>
    %cst_12 = arith.constant dense<0.000000e+00> : vector<16x512xf32>
    %13 = tpu.matmul %11, %12, %cst_12 {dimension_numbers = #tpu.dot_dimension_numbers<[1], [0], [0], [1], [0, 0, 1, 1], [], []>} : vector<16x1024xbf16>, vector<1024x512xbf16>, vector<16x512xf32> -> vector<16x512xf32>
    %c0_13 = arith.constant 0 : index
    %c0_14 = arith.constant 0 : index
    %14 = vector.load %arg5[%c0_13, %c0_14] : memref<1x512xf32, #tpu.memory_space<vmem>>, vector<1x512xf32>
    %15 = vector.broadcast %14 : vector<1x512xf32> to vector<16x512xf32>
    %16 = arith.addf %13, %15 : vector<16x512xf32>
    %c0_15 = arith.constant 0 : index
    %c0_16 = arith.constant 0 : index
    %17 = vector.load %arg6[%c0_15, %c0_16] : memref<16x512xf32, #tpu.memory_space<vmem>>, vector<16x512xf32>
    tpu.vector_store %arg6[%c0_15, %c0_16], %16 {strides = array<i32>} : memref<16x512xf32, #tpu.memory_space<vmem>>, vector<16x512xf32>,
    return
  }
  func.func @transform_0(%arg0: i32) -> (i32, i32) {
    %c0_i32 = arith.constant 0 : i32
    %c0_i32_0 = arith.constant 0 : i32
    return %arg0, %c0_i32 : i32, i32
  }
  func.func @transform_1(%arg0: i32) -> (i32, i32) {
    %c0_i32 = arith.constant 0 : i32
    %c0_i32_0 = arith.constant 0 : i32
    %c0_i32_1 = arith.constant 0 : i32
    return %c0_i32, %c0_i32_0 : i32, i32
  }
  func.func @transform_2(%arg0: i32) -> (i32, i32) {
    %c0_i32 = arith.constant 0 : i32
    %c0_i32_0 = arith.constant 0 : i32
    %c0_i32_1 = arith.constant 0 : i32
    return %c0_i32, %c0_i32_0 : i32, i32
  }
  func.func @transform_3(%arg0: i32) -> (i32, i32) {
    %c0_i32 = arith.constant 0 : i32
    %c0_i32_0 = arith.constant 0 : i32
    %c0_i32_1 = arith.constant 0 : i32
    return %c0_i32, %c0_i32_0 : i32, i32
  }
  func.func @transform_4(%arg0: i32) -> (i32, i32) {
    %c0_i32 = arith.constant 0 : i32
    %c0_i32_0 = arith.constant 0 : i32
    %c0_i32_1 = arith.constant 0 : i32
    return %c0_i32, %c0_i32_0 : i32, i32
  }
  func.func @transform_5(%arg0: i32) -> (i32, i32) {
    %c0_i32 = arith.constant 0 : i32
    %c0_i32_0 = arith.constant 0 : i32
    return %arg0, %c0_i32 : i32, i32
  }
}

</mosaic_0001>

<bundles_post_ra>
// kernel: tpu_custom_call.1
= control target key start
LH: loop header
LB: loop body
LE: loop exit
PB: predicated region body
PF: predicated region fallthrough
CT: control target
= control target key end

     0   :  { %10 = vsyncpa [#allocation4], 0  ;;  %s5273_s0 = inlined_call_operand.hbm [shape: f32[16,512], index: 0, kind: input, shape index: {}]   ;;  %s5274_s1 = inlined_call_operand.hbm [shape: bf16[512,1024], index: 1, kind: input, shape index: {}]   ;;  %s5275_s2 = inlined_call_operand.hbm [shape: f32[1,1024], index: 2, kind: input, shape index: {}]   ;;  %s5276_s3 = inlined_call_operand.hbm [shape: bf16[1024,512], index: 3, kind: input, shape index: {}]   ;;  %s5277_s4 = inlined_call_operand.vmem [shape: f32[1,512], index: 4, kind: input, shape index: {}]   ;;  %s5278_s5 = inlined_call_operand.hbm [shape: f32[16,512], index: 5, kind: output, shape index: {}]  }
   0x1   :  { %11 = vsyncpa [#allocation7], 0 }
   0x2   :  { %12 = vsyncpa [#allocation10], 0 }
   0x3   :  { %13 = vsyncpa [#allocation5], 0  ;;  %s5080_s18 = smov [#allocation6]   ;;  %s5081_s20 = smov [#allocation3]  }
   0x4   :  { %s31_s19 = sshll.u32 %s5080_s18, 4  ;;  %s19_s21 = sshll.u32 %s5081_s20, 4  ;;  %s32_s19 = int_to_ptr.vmem [resolvable:$true] %s31_s19  ;;  %s5119_s21 = int_to_ptr.vmem [resolvable:$true] %s19_s21 }
   0x5   :  { %s4962_s24 = scalar_lea.hbm %s5274_s1, 32768 }
   0x6   :  { %p4963_p0 = scmp.ne.s32.totalorder %s5274_s1, %s4962_s24  ;;  %p4966_p1 = scmp.lt.u32.totalorder %s4962_s24, %s5274_s1 }
   0x8   :  { %p4968_p2 = pnand %p4966_p1, %p4963_p0 }
   0xa   :  { %4971 = shalt.err (!%p4968_p2)
}
   0xb   :  { %s4972_s29 = scalar_lea.vmem %s32_s19, 32768  ;;  %p4977_p4 = scmp.lt.s32.totalorder %s32_s19, %s32_s19 }
   0xc   :  { %p4973_p3 = scmp.ne.s32.totalorder %s32_s19, %s4972_s29  ;;  %p4978_p5 = scmp.lt.s32.totalorder %s4972_s29, %s4972_s29 }
   0xe   :  { %p4979_p6 = por %p4978_p5, %p4977_p4 }
  0x10   :  { %p4980_p7 = pnand %p4979_p6, %p4973_p3 }
  0x12   :  { %4983 = shalt.err (!%p4980_p7)
}
  0x13   :  { %s5082_s30 = smov 512   ;;  %s5083_s6 = smov 32  }
  0x14   :  { %37 = dma.hbm_to_vmem [thread:$0]  %s5274_s1, 32768, %s32_s19, [#allocation7], %s5082_s30, %s5082_s30, %s5083_s6  }
  0x15   :  { %s4984_s11 = scalar_lea.hbm %s5273_s0, 1024 }
  0x16   :  { %p4985_p8 = scmp.ne.s32.totalorder %s5273_s0, %s4984_s11  ;;  %p4988_p9 = scmp.lt.u32.totalorder %s4984_s11, %s5273_s0 }
  0x18   :  { %p4990_p10 = pnand %p4988_p9, %p4985_p8 }
  0x1a   :  { %4993 = shalt.err (!%p4990_p10)
}
  0x1b   :  { %s4994_s16 = scalar_lea.vmem %s5119_s21, 1024  ;;  %p4999_p12 = scmp.lt.s32.totalorder %s5119_s21, %s5119_s21 }
  0x1c   :  { %p4995_p11 = scmp.ne.s32.totalorder %s5119_s21, %s4994_s16  ;;  %p5000_p13 = scmp.lt.s32.totalorder %s4994_s16, %s4994_s16 }
  0x1e   :  { %p5001_p0 = por %p5000_p13, %p4999_p12 }
  0x20   :  { %p5002_p1 = pnand %p5001_p0, %p4995_p11 }
  0x22   :  { %5005 = shalt.err (!%p5002_p1)
}
  0x23   :  { %25 = dma.hbm_to_vmem [thread:$0]  %s5273_s0, 1024, %s5119_s21, [#allocation4], %s5082_s30, %s5082_s30, %s5083_s6  }
  0x24   :  { %s5084_s18 = smov [#allocation8]   ;;  %s5085_s20 = smov [#allocation9]  }
  0x25   :  { %s44_s19 = sshll.u32 %s5084_s18, 4  ;;  %s53_s22 = sshll.u32 %s5085_s20, 4  ;;  %s45_s19 = int_to_ptr.vmem [resolvable:$true] %s44_s19  ;;  %s5156_s22 = int_to_ptr.vmem [resolvable:$true] %s53_s22 }
  0x26   :  { %s5006_s25 = scalar_lea.hbm %s5275_s2, 128 }
  0x27   :  { %p5007_p2 = scmp.ne.s32.totalorder %s5275_s2, %s5006_s25  ;;  %p5010_p3 = scmp.lt.u32.totalorder %s5006_s25, %s5275_s2 }
  0x29   :  { %p5012_p4 = pnand %p5010_p3, %p5007_p2 }
  0x2b   :  { %5015 = shalt.err (!%p5012_p4)
}
  0x2c   :  { %s5016_s0 = scalar_lea.vmem %s45_s19, 128  ;;  %p5021_p6 = scmp.lt.s32.totalorder %s45_s19, %s45_s19 }
  0x2d   :  { %p5017_p5 = scmp.ne.s32.totalorder %s45_s19, %s5016_s0  ;;  %p5022_p7 = scmp.lt.s32.totalorder %s5016_s0, %s5016_s0 }
  0x2f   :  { %p5023_p8 = por %p5022_p7, %p5021_p6 }
  0x31   :  { %p5024_p9 = pnand %p5023_p8, %p5017_p5 }
  0x33   :  { %5027 = shalt.err (!%p5024_p9)
}
  0x34   :  { %47 = dma.hbm_to_vmem [thread:$0]  %s5275_s2, 128, %s45_s19, [#allocation7]  }
  0x35   :  { %s5028_s10 = scalar_lea.hbm %s5276_s3, 32768 }
  0x36   :  { %p5029_p10 = scmp.ne.s32.totalorder %s5276_s3, %s5028_s10  ;;  %p5032_p11 = scmp.lt.u32.totalorder %s5028_s10, %s5276_s3 }
  0x38   :  { %p5034_p12 = pnand %p5032_p11, %p5029_p10 }
  0x3a   :  { %5037 = shalt.err (!%p5034_p12)
}
  0x3b   :  { %s5038_s15 = scalar_lea.vmem %s5156_s22, 32768  ;;  %p5043_p0 = scmp.lt.s32.totalorder %s5156_s22, %s5156_s22 }
  0x3c   :  { %p5039_p13 = scmp.ne.s32.totalorder %s5156_s22, %s5038_s15  ;;  %p5044_p1 = scmp.lt.s32.totalorder %s5038_s15, %s5038_s15 }
  0x3e   :  { %p5045_p2 = por %p5044_p1, %p5043_p0 }
  0x40   :  { %p5046_p3 = pnand %p5045_p2, %p5039_p13 }
  0x42   :  { %5049 = shalt.err (!%p5046_p3)
}
  0x43   :  { %s5086_s2 = smov 256   ;;  %s5087_s16 = smov 16  }
  0x44   :  { %59 = dma.hbm_to_vmem [thread:$0]  %s5276_s3, 32768, %s5156_s22, [#allocation10], %s5086_s2, %s5086_s2, %s5087_s16  }
  0x45   :  { %5072 = dma.done.wait [#allocation4], 1024  }
  0x46   :  { %5073 = vsyncadd [#allocation4], 4294966272 }
  0x47   :  { %5074 = dma.done.wait [#allocation7], 32896  }
  0x48   :  { %5075 = vsyncadd [#allocation7], 4294934400 }
  0x49   :  { %5076 = dma.done.wait [#allocation10], 32768  }
  0x4a   :  { %5077 = vsyncadd [#allocation10], 4294934528  ;;  %v86_v0 = vld [vmem:[#allocation6] sm:$0xff]  ;;  %v87_v2 = vld [vmem:[#allocation6 + $0x8] sm:$0xff]  ;;  %s5088_s19 = smov [#allocation11]  }
  0x4b   :  { %v90_v1 = vld [vmem:[#allocation6 + $0x20] sm:$0xff]  ;;  %v91_v4 = vld [vmem:[#allocation6 + $0x28] sm:$0xff] }
  0x4c   :  { %v3994_v3 = vcombine.high %v86_v0, %v90_v1  ;;  %v3993_v5 = vcombine.low %v86_v0, %v90_v1  ;;  %v94_v6 = vld [vmem:[#allocation6 + $0x40] sm:$0xff]  ;;  %v3996_v8 = vcombine.high %v87_v2, %v91_v4  ;;  %v3995_v9 = vcombine.low %v87_v2, %v91_v4  ;;  %v95_v11 = vld [vmem:[#allocation6 + $0x48] sm:$0xff] }
  0x4d   :  { %v98_v7 = vld [vmem:[#allocation6 + $0x60] sm:$0xff]  ;;  %v99_v12 = vld [vmem:[#allocation6 + $0x68] sm:$0xff] }
  0x4e   :  { %v4002_v10 = vcombine.high %v94_v6, %v98_v7  ;;  %v102_v13 = vld [vmem:[#allocation6 + $0x80] sm:$0xff]  ;;  %1664 = vmatprep.subr.bf16.mxu0 %v3994_v3  ;;  %v4004_v14 = vcombine.high %v95_v11, %v99_v12  ;;  %v103_v16 = vld [vmem:[#allocation6 + $0x88] sm:$0xff]  ;;  %1750 = vmatprep.subr.bf16.mxu1 %v3996_v8  ;;  %v4001_v18 = vcombine.low %v94_v6, %v98_v7 }
  0x4f   :  { %v106_v15 = vld [vmem:[#allocation6 + $0xa0] sm:$0xff]  ;;  %v107_v17 = vld [vmem:[#allocation6 + $0xa8] sm:$0xff]  ;;  %1665 = vmatpush1.bf16.msra.mxu0 %v3993_v5  ;;  %1751 = vmatpush1.bf16.msra.mxu1 %v3995_v9  ;;  %v4003_v19 = vcombine.low %v95_v11, %v99_v12 }
  0x50   :  { %1666 = vmatprep.subr.bf16.mxu0 %v4002_v10  ;;  %v4010_v20 = vcombine.high %v102_v13, %v106_v15  ;;  %1752 = vmatprep.subr.bf16.mxu1 %v4004_v14  ;;  %v4012_v21 = vcombine.high %v103_v16, %v107_v17  ;;  %v110_v22 = vld [vmem:[#allocation6 + $0xc0] sm:$0xff]  ;;  %v111_v24 = vld [vmem:[#allocation6 + $0xc8] sm:$0xff]  ;;  %v4009_v26 = vcombine.low %v102_v13, %v106_v15 }
  0x51   :  { %v114_v23 = vld [vmem:[#allocation6 + $0xe0] sm:$0xff]  ;;  %v115_v25 = vld [vmem:[#allocation6 + $0xe8] sm:$0xff]  ;;  %v4011_v27 = vcombine.low %v103_v16, %v107_v17 }
  0x52   :  { %v4018_v28 = vcombine.high %v110_v22, %v114_v23  ;;  %v4020_v29 = vcombine.high %v111_v24, %v115_v25  ;;  %v118_v30 = vld [vmem:[#allocation6 + $0x100] sm:$0xff]  ;;  %v119_v32 = vld [vmem:[#allocation6 + $0x108] sm:$0xff]  ;;  %v4017_v34 = vcombine.low %v110_v22, %v114_v23  ;;  %v4019_v35 = vcombine.low %v111_v24, %v115_v25 }
  0x53   :  { %1667 = vmatpush1.bf16.msra.mxu0 %v4001_v18  ;;  %1753 = vmatpush1.bf16.msra.mxu1 %v4003_v19  ;;  %v122_v31 = vld [vmem:[#allocation6 + $0x120] sm:$0xff]  ;;  %v123_v33 = vld [vmem:[#allocation6 + $0x128] sm:$0xff] }
  0x54   :  { %1668 = vmatprep.subr.bf16.mxu0 %v4010_v20  ;;  %1754 = vmatprep.subr.bf16.mxu1 %v4012_v21  ;;  %v4026_v36 = vcombine.high %v118_v30, %v122_v31  ;;  %v4028_v37 = vcombine.high %v119_v32, %v123_v33  ;;  %v126_v38 = vld [vmem:[#allocation6 + $0x140] sm:$0xff]  ;;  %v127_v40 = vld [vmem:[#allocation6 + $0x148] sm:$0xff]  ;;  %v4025_v42 = vcombine.low %v118_v30, %v122_v31 }
  0x55   :  { %v130_v39 = vld [vmem:[#allocation6 + $0x160] sm:$0xff]  ;;  %v131_v41 = vld [vmem:[#allocation6 + $0x168] sm:$0xff]  ;;  %v4027_v43 = vcombine.low %v119_v32, %v123_v33 }
  0x56   :  { %v4034_v44 = vcombine.high %v126_v38, %v130_v39  ;;  %v4036_v45 = vcombine.high %v127_v40, %v131_v41  ;;  %v134_v46 = vld [vmem:[#allocation6 + $0x180] sm:$0xff]  ;;  %v135_v48 = vld [vmem:[#allocation6 + $0x188] sm:$0xff]  ;;  %v4033_v50 = vcombine.low %v126_v38, %v130_v39  ;;  %v4035_v51 = vcombine.low %v127_v40, %v131_v41 }
  0x57   :  { %1669 = vmatpush1.bf16.msra.mxu0 %v4009_v26  ;;  %1755 = vmatpush1.bf16.msra.mxu1 %v4011_v27  ;;  %v138_v47 = vld [vmem:[#allocation6 + $0x1a0] sm:$0xff]  ;;  %v139_v49 = vld [vmem:[#allocation6 + $0x1a8] sm:$0xff] }
  0x58   :  { %1670 = vmatprep.subr.bf16.mxu0 %v4018_v28  ;;  %1756 = vmatprep.subr.bf16.mxu1 %v4020_v29  ;;  %v4042_v52 = vcombine.high %v134_v46, %v138_v47  ;;  %v75_v53 = vld [vmem:[#allocation3 + $0x8] sm:$0xff]  ;;  %v4044_v55 = vcombine.high %v135_v48, %v139_v49  ;;  %v142_v56 = vld [vmem:[#allocation6 + $0x1c0] sm:$0xff]  ;;  %v4041_v61 = vcombine.low %v134_v46, %v138_v47 }
  0x59   :  { %v79_v54 = vld [vmem:[#allocation3 + $0x28] sm:$0xff]  ;;  %v146_v57 = vld [vmem:[#allocation6 + $0x1e0] sm:$0xff]  ;;  %v4043_v62 = vcombine.low %v135_v48, %v139_v49 }
  0x5a   :  { %v5187_v58 = vpack.c.bf16 %v79_v54, %v75_v53  ;;  %v143_v59 = vld [vmem:[#allocation6 + $0x1c8] sm:$0xff]  ;;  %v4050_v63 = vcombine.high %v142_v56, %v146_v57  ;;  %v150_v1 = vld [vmem:[#allocation6 + $0x200] sm:$0xff]  ;;  %v4049_v5 = vcombine.low %v142_v56, %v146_v57 }
  0x5b   :  { %1671 = vmatpush1.bf16.msra.mxu0 %v4017_v34  ;;  %1757 = vmatpush1.bf16.msra.mxu1 %v4019_v35  ;;  %v147_v60 = vld [vmem:[#allocation6 + $0x1e8] sm:$0xff]  ;;  %v154_v2 = vld [vmem:[#allocation6 + $0x220] sm:$0xff] }
  0x5c   :  { %1672 = vmatprep.subr.bf16.mxu0 %v4026_v36  ;;  %1758 = vmatprep.subr.bf16.mxu1 %v4028_v37  ;;  %v4052_v0 = vcombine.high %v143_v59, %v147_v60  ;;  %v151_v3 = vld [vmem:[#allocation6 + $0x208] sm:$0xff]  ;;  %v4051_v6 = vcombine.low %v143_v59, %v147_v60  ;;  %v4058_v7 = vcombine.high %v150_v1, %v154_v2  ;;  %v158_v9 = vld [vmem:[#allocation6 + $0x240] sm:$0xff] }
  0x5d   :  { %1696 = vmatprep.mubr.bf16.mxu0 %v5187_v58  ;;  %1782 = vmatprep.mubr.bf16.mxu1 %v5187_v58  ;;  %v155_v4 = vld [vmem:[#allocation6 + $0x228] sm:$0xff]  ;;  %v162_v10 = vld [vmem:[#allocation6 + $0x260] sm:$0xff]  ;;  %v4057_v13 = vcombine.low %v150_v1, %v154_v2 }
  0x5e   :  { %v4060_v8 = vcombine.high %v151_v3, %v155_v4  ;;  %v159_v11 = vld [vmem:[#allocation6 + $0x248] sm:$0xff]  ;;  %v4059_v14 = vcombine.low %v151_v3, %v155_v4  ;;  %v4066_v15 = vcombine.high %v158_v9, %v162_v10  ;;  %v166_v17 = vld [vmem:[#allocation6 + $0x280] sm:$0xff]  ;;  %v4065_v21 = vcombine.low %v158_v9, %v162_v10 }
  0x5f   :  { %1673 = vmatpush1.bf16.msra.mxu0 %v4025_v42  ;;  %1759 = vmatpush1.bf16.msra.mxu1 %v4027_v43  ;;  %v163_v12 = vld [vmem:[#allocation6 + $0x268] sm:$0xff]  ;;  %v170_v18 = vld [vmem:[#allocation6 + $0x2a0] sm:$0xff] }
  0x60   :  { %1674 = vmatprep.subr.bf16.mxu0 %v4034_v44  ;;  %1760 = vmatprep.subr.bf16.mxu1 %v4036_v45  ;;  %v4068_v16 = vcombine.high %v159_v11, %v163_v12  ;;  %v167_v19 = vld [vmem:[#allocation6 + $0x288] sm:$0xff]  ;;  %v4067_v22 = vcombine.low %v159_v11, %v163_v12  ;;  %v4074_v23 = vcombine.high %v166_v17, %v170_v18  ;;  %v174_v25 = vld [vmem:[#allocation6 + $0x2c0] sm:$0xff] }
  0x61   :  { %v171_v20 = vld [vmem:[#allocation6 + $0x2a8] sm:$0xff]  ;;  %v178_v26 = vld [vmem:[#allocation6 + $0x2e0] sm:$0xff]  ;;  %v4073_v29 = vcombine.low %v166_v17, %v170_v18  ;;  %v77_v17 = vld [vmem:[#allocation3 + $0x18] sm:$0xff] }
  0x62   :  { %v4076_v24 = vcombine.high %v167_v19, %v171_v20  ;;  %v175_v27 = vld [vmem:[#allocation6 + $0x2c8] sm:$0xff]  ;;  %v4075_v30 = vcombine.low %v167_v19, %v171_v20  ;;  %v4082_v31 = vcombine.high %v174_v25, %v178_v26  ;;  %v182_v33 = vld [vmem:[#allocation6 + $0x300] sm:$0xff]  ;;  %v4081_v37 = vcombine.low %v174_v25, %v178_v26  ;;  %v81_v18 = vld [vmem:[#allocation3 + $0x38] sm:$0xff] }
  0x63   :  { %1675 = vmatpush1.bf16.msra.mxu0 %v4033_v50  ;;  %1761 = vmatpush1.bf16.msra.mxu1 %v4035_v51  ;;  %v179_v28 = vld [vmem:[#allocation6 + $0x2e8] sm:$0xff]  ;;  %v186_v34 = vld [vmem:[#allocation6 + $0x320] sm:$0xff]  ;;  %v5193_v25 = vpack.c.bf16 %v81_v18, %v77_v17 }
  0x64   :  { %1676 = vmatprep.subr.bf16.mxu0 %v4042_v52  ;;  %1762 = vmatprep.subr.bf16.mxu1 %v4044_v55  ;;  %v4084_v32 = vcombine.high %v175_v27, %v179_v28  ;;  %v183_v35 = vld [vmem:[#allocation6 + $0x308] sm:$0xff]  ;;  %v4083_v38 = vcombine.low %v175_v27, %v179_v28  ;;  %v4090_v39 = vcombine.high %v182_v33, %v186_v34  ;;  %v190_v41 = vld [vmem:[#allocation6 + $0x340] sm:$0xff] }
  0x65   :  { %v187_v36 = vld [vmem:[#allocation6 + $0x328] sm:$0xff]  ;;  %v194_v42 = vld [vmem:[#allocation6 + $0x360] sm:$0xff]  ;;  %v4089_v45 = vcombine.low %v182_v33, %v186_v34 }
  0x66   :  { %v4092_v40 = vcombine.high %v183_v35, %v187_v36  ;;  %v191_v43 = vld [vmem:[#allocation6 + $0x348] sm:$0xff]  ;;  %v4091_v46 = vcombine.low %v183_v35, %v187_v36  ;;  %v4098_v47 = vcombine.high %v190_v41, %v194_v42  ;;  %v198_v49 = vld [vmem:[#allocation6 + $0x380] sm:$0xff]  ;;  %v4097_v53 = vcombine.low %v190_v41, %v194_v42 }
  0x67   :  { %1677 = vmatpush1.bf16.msra.mxu0 %v4041_v61  ;;  %1763 = vmatpush1.bf16.msra.mxu1 %v4043_v62  ;;  %v195_v44 = vld [vmem:[#allocation6 + $0x368] sm:$0xff]  ;;  %v202_v50 = vld [vmem:[#allocation6 + $0x3a0] sm:$0xff] }
  0x68   :  { %1678 = vmatprep.subr.bf16.mxu0 %v4050_v63  ;;  %1764 = vmatprep.subr.bf16.mxu1 %v4052_v0  ;;  %v4100_v48 = vcombine.high %v191_v43, %v195_v44  ;;  %v199_v51 = vld [vmem:[#allocation6 + $0x388] sm:$0xff]  ;;  %v4099_v54 = vcombine.low %v191_v43, %v195_v44  ;;  %v4106_v55 = vcombine.high %v198_v49, %v202_v50  ;;  %v206_v57 = vld [vmem:[#allocation6 + $0x3c0] sm:$0xff] }
  0x69   :  { %v203_v52 = vld [vmem:[#allocation6 + $0x3a8] sm:$0xff]  ;;  %v210_v59 = vld [vmem:[#allocation6 + $0x3e0] sm:$0xff]  ;;  %v4105_v62 = vcombine.low %v198_v49, %v202_v50 }
  0x6a   :  { %v4108_v56 = vcombine.high %v199_v51, %v203_v52  ;;  %v207_v60 = vld [vmem:[#allocation6 + $0x3c8] sm:$0xff]  ;;  %v4107_v63 = vcombine.low %v199_v51, %v203_v52  ;;  %v4114_v0 = vcombine.high %v206_v57, %v210_v59  ;;  %v214_v2 = vld [vmem:[#allocation6 + $0x400] sm:$0xff] }
  0x6b   :  { %1679 = vmatpush1.bf16.msra.mxu0 %v4049_v5  ;;  %1765 = vmatpush1.bf16.msra.mxu1 %v4051_v6  ;;  %v211_v61 = vld [vmem:[#allocation6 + $0x3e8] sm:$0xff]  ;;  %v218_v3 = vld [vmem:[#allocation6 + $0x420] sm:$0xff]  ;;  %v4113_v6 = vcombine.low %v206_v57, %v210_v59 }
  0x6c   :  { %1680 = vmatprep.subr.bf16.mxu0 %v4058_v7  ;;  %1766 = vmatprep.subr.bf16.mxu1 %v4060_v8  ;;  %v4116_v1 = vcombine.high %v207_v60, %v211_v61  ;;  %v215_v4 = vld [vmem:[#allocation6 + $0x408] sm:$0xff]  ;;  %v74_v7 = vld [vmem:[#allocation3] sm:$0xff]  ;;  %v4115_v9 = vcombine.low %v207_v60, %v211_v61  ;;  %v4122_v10 = vcombine.high %v214_v2, %v218_v3 }
  0x6d   :  { %v219_v5 = vld [vmem:[#allocation6 + $0x428] sm:$0xff]  ;;  %v78_v8 = vld [vmem:[#allocation3 + $0x20] sm:$0xff]  ;;  %v4121_v19 = vcombine.low %v214_v2, %v218_v3 }
  0x6e   :  { %v4124_v11 = vcombine.high %v215_v4, %v219_v5  ;;  %v222_v12 = vld [vmem:[#allocation6 + $0x440] sm:$0xff]  ;;  %v4123_v20 = vcombine.low %v215_v4, %v219_v5  ;;  %v231_v26 = vld [vmem:[#allocation6 + $0x488] sm:$0xff] }
  0x6f   :  { %1681 = vmatpush1.bf16.msra.mxu0 %v4057_v13  ;;  %1767 = vmatpush1.bf16.msra.mxu1 %v4059_v14  ;;  %v226_v13 = vld [vmem:[#allocation6 + $0x460] sm:$0xff]  ;;  %v223_v14 = vld [vmem:[#allocation6 + $0x448] sm:$0xff] }
  0x70   :  { %1682 = vmatprep.subr.bf16.mxu0 %v4066_v15  ;;  %1768 = vmatprep.subr.bf16.mxu1 %v4068_v16  ;;  %v5191_v15 = vpack.c.bf16 %v78_v8, %v74_v7  ;;  %v227_v16 = vld [vmem:[#allocation6 + $0x468] sm:$0xff]  ;;  %v4129_v28 = vcombine.low %v222_v12, %v226_v13  ;;  %v278_v8 = vld [vmem:[#allocation6 + $0x600] sm:$0xff] }
  0x71   :  { %v235_v27 = vld [vmem:[#allocation6 + $0x4a8] sm:$0xff]  ;;  %v286_v17 = vld [vmem:[#allocation6 + $0x640] sm:$0xff] }
  0x72   :  { %v239_v33 = vld [vmem:[#allocation6 + $0x4c8] sm:$0xff]  ;;  %v4140_v34 = vcombine.high %v231_v26, %v235_v27  ;;  %v290_v18 = vld [vmem:[#allocation6 + $0x660] sm:$0xff] }
  0x73   :  { %1683 = vmatpush1.bf16.msra.mxu0 %v4065_v21  ;;  %1769 = vmatpush1.bf16.msra.mxu1 %v4067_v22  ;;  %v4130_v21 = vcombine.high %v222_v12, %v226_v13  ;;  %v4132_v22 = vcombine.high %v223_v14, %v227_v16  ;;  %v243_v35 = vld [vmem:[#allocation6 + $0x4e8] sm:$0xff] }
  0x74   :  { %1684 = vmatprep.subr.bf16.mxu0 %v4074_v23  ;;  %1770 = vmatprep.subr.bf16.mxu1 %v4076_v24  ;;  %v230_v23 = vld [vmem:[#allocation6 + $0x480] sm:$0xff]  ;;  %v247_v41 = vld [vmem:[#allocation6 + $0x508] sm:$0xff]  ;;  %v4148_v42 = vcombine.high %v239_v33, %v243_v35 }
  0x75   :  { %v234_v24 = vld [vmem:[#allocation6 + $0x4a0] sm:$0xff]  ;;  %v251_v43 = vld [vmem:[#allocation6 + $0x528] sm:$0xff] }
  0x76   :  { %v4137_v36 = vcombine.low %v230_v23, %v234_v24  ;;  %v255_v49 = vld [vmem:[#allocation6 + $0x548] sm:$0xff]  ;;  %v4156_v50 = vcombine.high %v247_v41, %v251_v43 }
  0x77   :  { %1685 = vmatpush1.bf16.msra.mxu0 %v4073_v29  ;;  %1771 = vmatpush1.bf16.msra.mxu1 %v4075_v30  ;;  %v4131_v29 = vcombine.low %v223_v14, %v227_v16  ;;  %v4138_v30 = vcombine.high %v230_v23, %v234_v24  ;;  %v259_v51 = vld [vmem:[#allocation6 + $0x568] sm:$0xff]  ;;  %v4194_v24 = vcombine.high %v286_v17, %v290_v18 }
  0x78   :  { %1686 = vmatprep.subr.bf16.mxu0 %v4082_v31  ;;  %1772 = vmatprep.subr.bf16.mxu1 %v4084_v32  ;;  %v238_v31 = vld [vmem:[#allocation6 + $0x4c0] sm:$0xff]  ;;  %v263_v57 = vld [vmem:[#allocation6 + $0x588] sm:$0xff]  ;;  %v4164_v59 = vcombine.high %v255_v49, %v259_v51 }
  0x79   :  { %v242_v32 = vld [vmem:[#allocation6 + $0x4e0] sm:$0xff]  ;;  %v267_v60 = vld [vmem:[#allocation6 + $0x5a8] sm:$0xff] }
  0x7a   :  { %v4145_v44 = vcombine.low %v238_v31, %v242_v32  ;;  %v271_v2 = vld [vmem:[#allocation6 + $0x5c8] sm:$0xff]  ;;  %v4172_v3 = vcombine.high %v263_v57, %v267_v60 }
  0x7b   :  { %1687 = vmatpush1.bf16.msra.mxu0 %v4081_v37  ;;  %1773 = vmatpush1.bf16.msra.mxu1 %v4083_v38  ;;  %v4139_v37 = vcombine.low %v231_v26, %v235_v27  ;;  %v4146_v38 = vcombine.high %v238_v31, %v242_v32  ;;  %v275_v4 = vld [vmem:[#allocation6 + $0x5e8] sm:$0xff]  ;;  %v294_v26 = vld [vmem:[#allocation6 + $0x680] sm:$0xff]  ;;  %v4193_v31 = vcombine.low %v286_v17, %v290_v18  ;;  %v80_v17 = vld [vmem:[#allocation3 + $0x30] sm:$0xff] }
  0x7c   :  { %1688 = vmatprep.subr.bf16.mxu0 %v4090_v39  ;;  %1774 = vmatprep.subr.bf16.mxu1 %v4092_v40  ;;  %v246_v39 = vld [vmem:[#allocation6 + $0x500] sm:$0xff]  ;;  %v283_v12 = vld [vmem:[#allocation6 + $0x628] sm:$0xff]  ;;  %v4179_v14 = vcombine.low %v271_v2, %v275_v4  ;;  %v93_v18 = vld [vmem:[#allocation6 + $0x38] sm:$0xff] }
  0x7d   :  { %v250_v40 = vld [vmem:[#allocation6 + $0x520] sm:$0xff] }
  0x7e   :  { %v4153_v52 = vcombine.low %v246_v39, %v250_v40  ;;  %v298_v27 = vld [vmem:[#allocation6 + $0x6a0] sm:$0xff] }
  0x7f   :  { %1689 = vmatpush1.bf16.msra.mxu0 %v4089_v45  ;;  %1775 = vmatpush1.bf16.msra.mxu1 %v4091_v46  ;;  %v4147_v45 = vcombine.low %v239_v33, %v243_v35  ;;  %v4154_v46 = vcombine.high %v246_v39, %v250_v40  ;;  %v4202_v33 = vcombine.high %v294_v26, %v298_v27  ;;  %v306_v35 = vld [vmem:[#allocation6 + $0x6e0] sm:$0xff] }
  0x80   :  { %1690 = vmatprep.subr.bf16.mxu0 %v4098_v47  ;;  %1776 = vmatprep.subr.bf16.mxu1 %v4100_v48  ;;  %v254_v47 = vld [vmem:[#allocation6 + $0x540] sm:$0xff]  ;;  %v4201_v39 = vcombine.low %v294_v26, %v298_v27  ;;  %v101_v27 = vld [vmem:[#allocation6 + $0x78] sm:$0xff] }
  0x81   :  { %v258_v48 = vld [vmem:[#allocation6 + $0x560] sm:$0xff] }
  0x82   :  { %v4161_v61 = vcombine.low %v254_v47, %v258_v48 }
  0x83   :  { %1691 = vmatpush1.bf16.msra.mxu0 %v4097_v53  ;;  %1777 = vmatpush1.bf16.msra.mxu1 %v4099_v54  ;;  %v4155_v53 = vcombine.low %v247_v41, %v251_v43  ;;  %v4162_v54 = vcombine.high %v254_v47, %v258_v48  ;;  %v314_v43 = vld [vmem:[#allocation6 + $0x720] sm:$0xff] }
  0x84   :  { %1692 = vmatprep.subr.bf16.mxu0 %v4106_v55  ;;  %1778 = vmatprep.subr.bf16.mxu1 %v4108_v56  ;;  %v262_v55 = vld [vmem:[#allocation6 + $0x580] sm:$0xff] }
  0x85   :  { %v266_v56 = vld [vmem:[#allocation6 + $0x5a0] sm:$0xff] }
  0x86   :  { %v4169_v5 = vcombine.low %v262_v55, %v266_v56 }
  0x87   :  { %1693 = vmatpush1.bf16.msra.mxu0 %v4105_v62  ;;  %1779 = vmatpush1.bf16.msra.mxu1 %v4107_v63  ;;  %v4163_v62 = vcombine.low %v255_v49, %v259_v51  ;;  %v4170_v63 = vcombine.high %v262_v55, %v266_v56  ;;  %v322_v51 = vld [vmem:[#allocation6 + $0x760] sm:$0xff] }
  0x88   :  { %1694 = vmatprep.subr.bf16.mxu0 %v4114_v0  ;;  %1780 = vmatprep.subr.bf16.mxu1 %v4116_v1  ;;  %v270_v0 = vld [vmem:[#allocation6 + $0x5c0] sm:$0xff] }
  0x89   :  { %v274_v1 = vld [vmem:[#allocation6 + $0x5e0] sm:$0xff] }
  0x8a   :  { %v4178_v7 = vcombine.high %v270_v0, %v274_v1  ;;  %v4177_v13 = vcombine.low %v270_v0, %v274_v1 }
  0x8b   :  { %1695 = vmatpush1.bf16.msra.mxu0 %v4113_v6  ;;  %1781 = vmatpush1.bf16.msra.mxu1 %v4115_v9  ;;  %v4171_v6 = vcombine.low %v263_v57, %v267_v60  ;;  %v282_v9 = vld [vmem:[#allocation6 + $0x620] sm:$0xff] }
  0x8c   :  { %1707 = vmatprep.subr.bf16.mxu0 %v4122_v10  ;;  %1793 = vmatprep.subr.bf16.mxu1 %v4124_v11  ;;  %v279_v10 = vld [vmem:[#allocation6 + $0x608] sm:$0xff]  ;;  %v4180_v11 = vcombine.high %v271_v2, %v275_v4  ;;  %v4186_v16 = vcombine.high %v278_v8, %v282_v9  ;;  %v330_v60 = vld [vmem:[#allocation6 + $0x7a0] sm:$0xff] }
  0x8d   :  { %v4187_v23 = vcombine.low %v279_v10, %v283_v12  ;;  %v338_v4 = vld [vmem:[#allocation6 + $0x7e0] sm:$0xff] }
  0x8e   :  { %1697 = vmatmul.mubr.bf16.vlgmr.msra.gmra.mrb[0].mxu0 %v5191_v15  ;;  %1783 = vmatmul.mubr.bf16.vlgmr.msra.gmra.mrb[0].mxu1 %v5191_v15 }
  0x8f   :  { %1708 = vmatpush1.bf16.msra.mxu0 %v4121_v19  ;;  %1794 = vmatpush1.bf16.msra.mxu1 %v4123_v20  ;;  %v287_v19 = vld [vmem:[#allocation6 + $0x648] sm:$0xff]  ;;  %v4188_v20 = vcombine.high %v279_v10, %v283_v12  ;;  %v92_v12 = vld [vmem:[#allocation6 + $0x30] sm:$0xff] }
  0x90   :  { %1709 = vmatprep.subr.bf16.mxu0 %v4130_v21  ;;  %1795 = vmatprep.subr.bf16.mxu1 %v4132_v22  ;;  %v291_v21 = vld [vmem:[#allocation6 + $0x668] sm:$0xff]  ;;  %v4185_v22 = vcombine.low %v278_v8, %v282_v9 }
  0x91   :  { %1739 = vmatprep.mubr.bf16.mxu0 %v5193_v25  ;;  %1825 = vmatprep.mubr.bf16.mxu1 %v5193_v25  ;;  %v4195_v32 = vcombine.low %v287_v19, %v291_v21 }
  0x93   :  { %1710 = vmatpush1.bf16.msra.mxu0 %v4129_v28  ;;  %1796 = vmatpush1.bf16.msra.mxu1 %v4131_v29  ;;  %v295_v28 = vld [vmem:[#allocation6 + $0x688] sm:$0xff]  ;;  %v4196_v29 = vcombine.high %v287_v19, %v291_v21 }
  0x94   :  { %1711 = vmatprep.subr.bf16.mxu0 %v4138_v30  ;;  %1797 = vmatprep.subr.bf16.mxu1 %v4140_v34  ;;  %v299_v30 = vld [vmem:[#allocation6 + $0x6a8] sm:$0xff]  ;;  %v302_v34 = vld [vmem:[#allocation6 + $0x6c0] sm:$0xff] }
  0x95   :  { %v4203_v40 = vcombine.low %v295_v28, %v299_v30  ;;  %v4210_v41 = vcombine.high %v302_v34, %v306_v35  ;;  %v4209_v47 = vcombine.low %v302_v34, %v306_v35  ;;  %v105_v34 = vld [vmem:[#allocation6 + $0x98] sm:$0xff] }
  0x96   :  { %v109_v35 = vld [vmem:[#allocation6 + $0xb8] sm:$0xff] }
  0x97   :  { %1712 = vmatpush1.bf16.msra.mxu0 %v4137_v36  ;;  %1798 = vmatpush1.bf16.msra.mxu1 %v4139_v37  ;;  %v303_v36 = vld [vmem:[#allocation6 + $0x6c8] sm:$0xff]  ;;  %v4204_v37 = vcombine.high %v295_v28, %v299_v30  ;;  %v104_v30 = vld [vmem:[#allocation6 + $0x90] sm:$0xff] }
  0x98   :  { %1713 = vmatprep.subr.bf16.mxu0 %v4146_v38  ;;  %1799 = vmatprep.subr.bf16.mxu1 %v4148_v42  ;;  %v307_v38 = vld [vmem:[#allocation6 + $0x6e8] sm:$0xff]  ;;  %v310_v42 = vld [vmem:[#allocation6 + $0x700] sm:$0xff] }
  0x99   :  { %v4211_v48 = vcombine.low %v303_v36, %v307_v38  ;;  %v4218_v49 = vcombine.high %v310_v42, %v314_v43  ;;  %v4217_v55 = vcombine.low %v310_v42, %v314_v43  ;;  %v4016_v42 = vcombine.high %v105_v34, %v109_v35  ;;  %v113_v43 = vld [vmem:[#allocation6 + $0xd8] sm:$0xff] }
  0x9b   :  { %1714 = vmatpush1.bf16.msra.mxu0 %v4145_v44  ;;  %1800 = vmatpush1.bf16.msra.mxu1 %v4147_v45  ;;  %v311_v44 = vld [vmem:[#allocation6 + $0x708] sm:$0xff]  ;;  %v4212_v45 = vcombine.high %v303_v36, %v307_v38 }
  0x9c   :  { %1715 = vmatprep.subr.bf16.mxu0 %v4154_v46  ;;  %1801 = vmatprep.subr.bf16.mxu1 %v4156_v50  ;;  %v315_v46 = vld [vmem:[#allocation6 + $0x728] sm:$0xff]  ;;  %v318_v50 = vld [vmem:[#allocation6 + $0x740] sm:$0xff] }
  0x9d   :  { %v4219_v56 = vcombine.low %v311_v44, %v315_v46  ;;  %v4226_v57 = vcombine.high %v318_v50, %v322_v51  ;;  %v4225_v0 = vcombine.low %v318_v50, %v322_v51  ;;  %v121_v50 = vld [vmem:[#allocation6 + $0x118] sm:$0xff] }
  0x9f   :  { %1716 = vmatpush1.bf16.msra.mxu0 %v4153_v52  ;;  %1802 = vmatpush1.bf16.msra.mxu1 %v4155_v53  ;;  %v319_v52 = vld [vmem:[#allocation6 + $0x748] sm:$0xff]  ;;  %v4220_v53 = vcombine.high %v311_v44, %v315_v46  ;;  %v117_v44 = vld [vmem:[#allocation6 + $0xf8] sm:$0xff]  ;;  %v4015_v46 = vcombine.low %v105_v34, %v109_v35  ;;  %v168_v35 = vld [vmem:[#allocation6 + $0x290] sm:$0xff] }
  0xa0   :  { %1717 = vmatprep.subr.bf16.mxu0 %v4162_v54  ;;  %1803 = vmatprep.subr.bf16.mxu1 %v4164_v59  ;;  %v323_v54 = vld [vmem:[#allocation6 + $0x768] sm:$0xff]  ;;  %v326_v59 = vld [vmem:[#allocation6 + $0x780] sm:$0xff]  ;;  %v4024_v51 = vcombine.high %v113_v43, %v117_v44 }
  0xa1   :  { %v4227_v1 = vcombine.low %v319_v52, %v323_v54  ;;  %v4234_v2 = vcombine.high %v326_v59, %v330_v60  ;;  %v4233_v8 = vcombine.low %v326_v59, %v330_v60  ;;  %v133_v60 = vld [vmem:[#allocation6 + $0x178] sm:$0xff] }
  0xa3   :  { %1718 = vmatpush1.bf16.msra.mxu0 %v4161_v61  ;;  %1804 = vmatpush1.bf16.msra.mxu1 %v4163_v62  ;;  %v327_v61 = vld [vmem:[#allocation6 + $0x788] sm:$0xff]  ;;  %v4228_v62 = vcombine.high %v319_v52, %v323_v54  ;;  %v125_v52 = vld [vmem:[#allocation6 + $0x138] sm:$0xff]  ;;  %v4023_v54 = vcombine.low %v113_v43, %v117_v44  ;;  %v176_v43 = vld [vmem:[#allocation6 + $0x2d0] sm:$0xff] }
  0xa4   :  { %1719 = vmatprep.subr.bf16.mxu0 %v4170_v63  ;;  %1805 = vmatprep.subr.bf16.mxu1 %v4172_v3  ;;  %v331_v63 = vld [vmem:[#allocation6 + $0x7a8] sm:$0xff]  ;;  %v334_v3 = vld [vmem:[#allocation6 + $0x7c0] sm:$0xff]  ;;  %v4032_v59 = vcombine.high %v121_v50, %v125_v52  ;;  %v180_v44 = vld [vmem:[#allocation6 + $0x2f0] sm:$0xff] }
  0xa5   :  { %v4235_v9 = vcombine.low %v327_v61, %v331_v63  ;;  %v4242_v10 = vcombine.high %v334_v3, %v338_v4  ;;  %v4241_v19 = vcombine.low %v334_v3, %v338_v4  ;;  %v141_v4 = vld [vmem:[#allocation6 + $0x1b8] sm:$0xff] }
  0xa7   :  { %1720 = vmatpush1.bf16.msra.mxu0 %v4169_v5  ;;  %1806 = vmatpush1.bf16.msra.mxu1 %v4171_v6  ;;  %v335_v5 = vld [vmem:[#allocation6 + $0x7c8] sm:$0xff]  ;;  %v4236_v6 = vcombine.high %v327_v61, %v331_v63 }
  0xa8   :  { %1721 = vmatprep.subr.bf16.mxu0 %v4178_v7  ;;  %1807 = vmatprep.subr.bf16.mxu1 %v4180_v11  ;;  %v339_v7 = vld [vmem:[#allocation6 + $0x7e8] sm:$0xff]  ;;  %v88_v11 = vld [vmem:[#allocation6 + $0x10] sm:$0xff] }
  0xa9   :  { %v3998_v21 = vcombine.high %v88_v11, %v92_v12 }
  0xab   :  { %1722 = vmatpush1.bf16.msra.mxu0 %v4177_v13  ;;  %1808 = vmatpush1.bf16.msra.mxu1 %v4179_v14  ;;  %v89_v13 = vld [vmem:[#allocation6 + $0x18] sm:$0xff]  ;;  %v4244_v14 = vcombine.high %v335_v5, %v339_v7 }
  0xac   :  { %1723 = vmatprep.subr.bf16.mxu0 %v4186_v16  ;;  %1809 = vmatprep.subr.bf16.mxu1 %v4188_v20  ;;  %v76_v16 = vld [vmem:[#allocation3 + $0x10] sm:$0xff]  ;;  %v4243_v20 = vcombine.low %v335_v5, %v339_v7  ;;  %v4000_v26 = vcombine.high %v89_v13, %v93_v18 }
  0xad   :  { %v5199_v28 = vpack.c.bf16 %v80_v17, %v76_v16  ;;  %v152_v17 = vld [vmem:[#allocation6 + $0x210] sm:$0xff] }
  0xaf   :  { %1724 = vmatpush1.bf16.msra.mxu0 %v4185_v22  ;;  %1810 = vmatpush1.bf16.msra.mxu1 %v4187_v23  ;;  %v96_v22 = vld [vmem:[#allocation6 + $0x50] sm:$0xff] }
  0xb0   :  { %1725 = vmatprep.subr.bf16.mxu0 %v4194_v24  ;;  %1811 = vmatprep.subr.bf16.mxu1 %v4196_v29  ;;  %v100_v23 = vld [vmem:[#allocation6 + $0x70] sm:$0xff]  ;;  %v97_v24 = vld [vmem:[#allocation6 + $0x58] sm:$0xff]  ;;  %v3997_v29 = vcombine.low %v88_v11, %v92_v12 }
  0xb1   :  { %v4008_v36 = vcombine.high %v97_v24, %v101_v27  ;;  %v4007_v38 = vcombine.low %v97_v24, %v101_v27  ;;  %v149_v12 = vld [vmem:[#allocation6 + $0x1f8] sm:$0xff]  ;;  %v164_v27 = vld [vmem:[#allocation6 + $0x270] sm:$0xff] }
  0xb3   :  { %1726 = vmatpush1.bf16.msra.mxu0 %v4193_v31  ;;  %1812 = vmatpush1.bf16.msra.mxu1 %v4195_v32  ;;  %v108_v31 = vld [vmem:[#allocation6 + $0xb0] sm:$0xff]  ;;  %v3999_v32 = vcombine.low %v89_v13, %v93_v18 }
  0xb4   :  { %1727 = vmatprep.subr.bf16.mxu0 %v4202_v33  ;;  %1813 = vmatprep.subr.bf16.mxu1 %v4204_v37  ;;  %v4006_v33 = vcombine.high %v96_v22, %v100_v23  ;;  %v4005_v37 = vcombine.low %v96_v22, %v100_v23  ;;  %v156_v18 = vld [vmem:[#allocation6 + $0x230] sm:$0xff] }
  0xb5   :  { %v4062_v24 = vcombine.high %v152_v17, %v156_v18 }
  0xb7   :  { %1728 = vmatpush1.bf16.msra.mxu0 %v4201_v39  ;;  %1814 = vmatpush1.bf16.msra.mxu1 %v4203_v40  ;;  %v4014_v39 = vcombine.high %v104_v30, %v108_v31  ;;  %v112_v40 = vld [vmem:[#allocation6 + $0xd0] sm:$0xff] }
  0xb8   :  { %1729 = vmatprep.subr.bf16.mxu0 %v4210_v41  ;;  %1815 = vmatprep.subr.bf16.mxu1 %v4212_v45  ;;  %v116_v41 = vld [vmem:[#allocation6 + $0xf0] sm:$0xff]  ;;  %v4013_v45 = vcombine.low %v104_v30, %v108_v31  ;;  %v165_v31 = vld [vmem:[#allocation6 + $0x278] sm:$0xff] }
  0xbb   :  { %1730 = vmatpush1.bf16.msra.mxu0 %v4209_v47  ;;  %1816 = vmatpush1.bf16.msra.mxu1 %v4211_v48  ;;  %v4022_v47 = vcombine.high %v112_v40, %v116_v41  ;;  %v120_v48 = vld [vmem:[#allocation6 + $0x110] sm:$0xff] }
  0xbc   :  { %1731 = vmatprep.subr.bf16.mxu0 %v4218_v49  ;;  %1817 = vmatprep.subr.bf16.mxu1 %v4220_v53  ;;  %v124_v49 = vld [vmem:[#allocation6 + $0x130] sm:$0xff]  ;;  %v4021_v53 = vcombine.low %v112_v40, %v116_v41 }
  0xbd   :  { %v4029_v61 = vcombine.low %v120_v48, %v124_v49 }
  0xbf   :  { %1732 = vmatpush1.bf16.msra.mxu0 %v4217_v55  ;;  %1818 = vmatpush1.bf16.msra.mxu1 %v4219_v56  ;;  %v4030_v55 = vcombine.high %v120_v48, %v124_v49  ;;  %v128_v56 = vld [vmem:[#allocation6 + $0x150] sm:$0xff] }
  0xc0   :  { %1733 = vmatprep.subr.bf16.mxu0 %v4226_v57  ;;  %1819 = vmatprep.subr.bf16.mxu1 %v4228_v62  ;;  %v129_v57 = vld [vmem:[#allocation6 + $0x158] sm:$0xff]  ;;  %v4031_v62 = vcombine.low %v121_v50, %v125_v52  ;;  %v4086_v50 = vcombine.high %v176_v43, %v180_v44  ;;  %v188_v52 = vld [vmem:[#allocation6 + $0x330] sm:$0xff] }
  0xc1   :  { %v4040_v3 = vcombine.high %v129_v57, %v133_v60 }
  0xc3   :  { %1734 = vmatpush1.bf16.msra.mxu0 %v4225_v0  ;;  %1820 = vmatpush1.bf16.msra.mxu1 %v4227_v1  ;;  %v136_v0 = vld [vmem:[#allocation6 + $0x190] sm:$0xff] }
  0xc4   :  { %1735 = vmatprep.subr.bf16.mxu0 %v4234_v2  ;;  %1821 = vmatprep.subr.bf16.mxu1 %v4236_v6  ;;  %v140_v1 = vld [vmem:[#allocation6 + $0x1b0] sm:$0xff]  ;;  %v137_v2 = vld [vmem:[#allocation6 + $0x198] sm:$0xff]  ;;  %v4039_v6 = vcombine.low %v129_v57, %v133_v60 }
  0xc5   :  { %v4046_v7 = vcombine.high %v136_v0, %v140_v1  ;;  %v4048_v11 = vcombine.high %v137_v2, %v141_v4  ;;  %v4045_v13 = vcombine.low %v136_v0, %v140_v1  ;;  %v196_v60 = vld [vmem:[#allocation6 + $0x370] sm:$0xff] }
  0xc7   :  { %1736 = vmatpush1.bf16.msra.mxu0 %v4233_v8  ;;  %1822 = vmatpush1.bf16.msra.mxu1 %v4235_v9  ;;  %v144_v8 = vld [vmem:[#allocation6 + $0x1d0] sm:$0xff] }
  0xc8   :  { %1737 = vmatprep.subr.bf16.mxu0 %v4242_v10  ;;  %1823 = vmatprep.subr.bf16.mxu1 %v4244_v14  ;;  %v148_v9 = vld [vmem:[#allocation6 + $0x1f0] sm:$0xff]  ;;  %v145_v10 = vld [vmem:[#allocation6 + $0x1d8] sm:$0xff]  ;;  %v4047_v14 = vcombine.low %v137_v2, %v141_v4 }
  0xc9   :  { %v4054_v16 = vcombine.high %v144_v8, %v148_v9  ;;  %v4053_v22 = vcombine.low %v144_v8, %v148_v9  ;;  %v4055_v23 = vcombine.low %v145_v10, %v149_v12  ;;  %v204_v4 = vld [vmem:[#allocation6 + $0x3b0] sm:$0xff] }
  0xcb   :  { %1738 = vmatpush1.bf16.msra.mxu0 %v4241_v19  ;;  %1824 = vmatpush1.bf16.msra.mxu1 %v4243_v20  ;;  %v153_v19 = vld [vmem:[#allocation6 + $0x218] sm:$0xff]  ;;  %v4056_v20 = vcombine.high %v145_v10, %v149_v12  ;;  %v212_v12 = vld [vmem:[#allocation6 + $0x3f0] sm:$0xff] }
  0xcc   :  { %1836 = vmatprep.subr.bf16.mxu0 %v3998_v21  ;;  %1922 = vmatprep.subr.bf16.mxu1 %v4000_v26  ;;  %v157_v21 = vld [vmem:[#allocation6 + $0x238] sm:$0xff]  ;;  %v160_v26 = vld [vmem:[#allocation6 + $0x250] sm:$0xff] }
  0xcd   :  { %v4064_v30 = vcombine.high %v153_v19, %v157_v21  ;;  %v4070_v34 = vcombine.high %v160_v26, %v164_v27  ;;  %v4069_v40 = vcombine.low %v160_v26, %v164_v27  ;;  %v224_v27 = vld [vmem:[#allocation6 + $0x450] sm:$0xff] }
  0xce   :  { %1740 = vmatmul.mubr.bf16.vlgmr.msra.gmra.mrb[0].mxu0 %v5199_v28  ;;  %1826 = vmatmul.mubr.bf16.vlgmr.msra.gmra.mrb[0].mxu1 %v5199_v28 }
  0xcf   :  { %1837 = vmatpush1.bf16.msra.mxu0 %v3997_v29  ;;  %1923 = vmatpush1.bf16.msra.mxu1 %v3999_v32  ;;  %v161_v29 = vld [vmem:[#allocation6 + $0x258] sm:$0xff]  ;;  %v4061_v32 = vcombine.low %v152_v17, %v156_v18  ;;  %v216_v18 = vld [vmem:[#allocation6 + $0x410] sm:$0xff] }
  0xd0   :  { %1838 = vmatprep.subr.bf16.mxu0 %v4006_v33  ;;  %1924 = vmatprep.subr.bf16.mxu1 %v4008_v36  ;;  %v4063_v33 = vcombine.low %v153_v19, %v157_v21  ;;  %v172_v36 = vld [vmem:[#allocation6 + $0x2b0] sm:$0xff]  ;;  %v4071_v41 = vcombine.low %v161_v29, %v165_v31 }
  0xd1   :  { %1868 = vmatprep.mubr.bf16.mxu0 %v5187_v58  ;;  %1954 = vmatprep.mubr.bf16.mxu1 %v5187_v58  ;;  %v132_v58 = vld [vmem:[#allocation6 + $0x170] sm:$0xff]  ;;  %v4077_v48 = vcombine.low %v168_v35, %v172_v36 }
  0xd2   :  { %v4038_v63 = vcombine.high %v128_v56, %v132_v58  ;;  %v4037_v5 = vcombine.low %v128_v56, %v132_v58  ;;  %v4085_v56 = vcombine.low %v176_v43, %v180_v44  ;;  %v220_v19 = vld [vmem:[#allocation6 + $0x430] sm:$0xff] }
  0xd3   :  { %1839 = vmatpush1.bf16.msra.mxu0 %v4005_v37  ;;  %1925 = vmatpush1.bf16.msra.mxu1 %v4007_v38  ;;  %v169_v37 = vld [vmem:[#allocation6 + $0x298] sm:$0xff]  ;;  %v4072_v38 = vcombine.high %v161_v29, %v165_v31  ;;  %v228_v29 = vld [vmem:[#allocation6 + $0x470] sm:$0xff]  ;;  %v4126_v31 = vcombine.high %v216_v18, %v220_v19 }
  0xd4   :  { %1840 = vmatprep.subr.bf16.mxu0 %v4014_v39  ;;  %1926 = vmatprep.subr.bf16.mxu1 %v4016_v42  ;;  %v173_v39 = vld [vmem:[#allocation6 + $0x2b8] sm:$0xff]  ;;  %v4078_v42 = vcombine.high %v168_v35, %v172_v36  ;;  %v4125_v35 = vcombine.low %v216_v18, %v220_v19  ;;  %v4133_v43 = vcombine.low %v224_v27, %v228_v29 }
  0xd5   :  { %v4079_v49 = vcombine.low %v169_v37, %v173_v39 }
  0xd7   :  { %1841 = vmatpush1.bf16.msra.mxu0 %v4013_v45  ;;  %1927 = vmatpush1.bf16.msra.mxu1 %v4015_v46  ;;  %v177_v45 = vld [vmem:[#allocation6 + $0x2d8] sm:$0xff]  ;;  %v4080_v46 = vcombine.high %v169_v37, %v173_v39  ;;  %v4134_v37 = vcombine.high %v224_v27, %v228_v29  ;;  %v232_v39 = vld [vmem:[#allocation6 + $0x490] sm:$0xff] }
  0xd8   :  { %1842 = vmatprep.subr.bf16.mxu0 %v4022_v47  ;;  %1928 = vmatprep.subr.bf16.mxu1 %v4024_v51  ;;  %v181_v47 = vld [vmem:[#allocation6 + $0x2f8] sm:$0xff]  ;;  %v184_v51 = vld [vmem:[#allocation6 + $0x310] sm:$0xff] }
  0xd9   :  { %v4087_v58 = vcombine.low %v177_v45, %v181_v47  ;;  %v4094_v57 = vcombine.high %v184_v51, %v188_v52  ;;  %v4093_v0 = vcombine.low %v184_v51, %v188_v52 }
  0xdb   :  { %1843 = vmatpush1.bf16.msra.mxu0 %v4021_v53  ;;  %1929 = vmatpush1.bf16.msra.mxu1 %v4023_v54  ;;  %v185_v53 = vld [vmem:[#allocation6 + $0x318] sm:$0xff]  ;;  %v4088_v54 = vcombine.high %v177_v45, %v181_v47  ;;  %v240_v47 = vld [vmem:[#allocation6 + $0x4d0] sm:$0xff] }
  0xdc   :  { %1844 = vmatprep.subr.bf16.mxu0 %v4030_v55  ;;  %1930 = vmatprep.subr.bf16.mxu1 %v4032_v59  ;;  %v189_v55 = vld [vmem:[#allocation6 + $0x338] sm:$0xff]  ;;  %v192_v59 = vld [vmem:[#allocation6 + $0x350] sm:$0xff] }
  0xdd   :  { %v4095_v1 = vcombine.low %v185_v53, %v189_v55  ;;  %v4102_v2 = vcombine.high %v192_v59, %v196_v60  ;;  %v4101_v8 = vcombine.low %v192_v59, %v196_v60 }
  0xdf   :  { %1845 = vmatpush1.bf16.msra.mxu0 %v4029_v61  ;;  %1931 = vmatpush1.bf16.msra.mxu1 %v4031_v62  ;;  %v193_v61 = vld [vmem:[#allocation6 + $0x358] sm:$0xff]  ;;  %v4096_v62 = vcombine.high %v185_v53, %v189_v55  ;;  %v252_v55 = vld [vmem:[#allocation6 + $0x530] sm:$0xff] }
  0xe0   :  { %1846 = vmatprep.subr.bf16.mxu0 %v4038_v63  ;;  %1932 = vmatprep.subr.bf16.mxu1 %v4040_v3  ;;  %v197_v63 = vld [vmem:[#allocation6 + $0x378] sm:$0xff]  ;;  %v200_v3 = vld [vmem:[#allocation6 + $0x390] sm:$0xff] }
  0xe1   :  { %v4103_v9 = vcombine.low %v193_v61, %v197_v63  ;;  %v4110_v10 = vcombine.high %v200_v3, %v204_v4  ;;  %v4109_v17 = vcombine.low %v200_v3, %v204_v4 }
  0xe3   :  { %1847 = vmatpush1.bf16.msra.mxu0 %v4037_v5  ;;  %1933 = vmatpush1.bf16.msra.mxu1 %v4039_v6  ;;  %v201_v5 = vld [vmem:[#allocation6 + $0x398] sm:$0xff]  ;;  %v4104_v6 = vcombine.high %v193_v61, %v197_v63  ;;  %v256_v61 = vld [vmem:[#allocation6 + $0x550] sm:$0xff] }
  0xe4   :  { %1848 = vmatprep.subr.bf16.mxu0 %v4046_v7  ;;  %1934 = vmatprep.subr.bf16.mxu1 %v4048_v11  ;;  %v205_v7 = vld [vmem:[#allocation6 + $0x3b8] sm:$0xff]  ;;  %v208_v11 = vld [vmem:[#allocation6 + $0x3d0] sm:$0xff] }
  0xe5   :  { %v4118_v21 = vcombine.high %v208_v11, %v212_v12  ;;  %v4117_v26 = vcombine.low %v208_v11, %v212_v12  ;;  %v257_v63 = vld [vmem:[#allocation6 + $0x558] sm:$0xff] }
  0xe7   :  { %1849 = vmatpush1.bf16.msra.mxu0 %v4045_v13  ;;  %1935 = vmatpush1.bf16.msra.mxu1 %v4047_v14  ;;  %v209_v13 = vld [vmem:[#allocation6 + $0x3d8] sm:$0xff]  ;;  %v4112_v14 = vcombine.high %v201_v5, %v205_v7 }
  0xe8   :  { %1850 = vmatprep.subr.bf16.mxu0 %v4054_v16  ;;  %1936 = vmatprep.subr.bf16.mxu1 %v4056_v20  ;;  %v213_v16 = vld [vmem:[#allocation6 + $0x3f8] sm:$0xff]  ;;  %v4111_v20 = vcombine.low %v201_v5, %v205_v7  ;;  %v264_v5 = vld [vmem:[#allocation6 + $0x590] sm:$0xff] }
  0xe9   :  { %v265_v7 = vld [vmem:[#allocation6 + $0x598] sm:$0xff] }
  0xeb   :  { %1851 = vmatpush1.bf16.msra.mxu0 %v4053_v22  ;;  %1937 = vmatpush1.bf16.msra.mxu1 %v4055_v23  ;;  %v217_v22 = vld [vmem:[#allocation6 + $0x418] sm:$0xff] }
  0xec   :  { %1852 = vmatprep.subr.bf16.mxu0 %v4062_v24  ;;  %1938 = vmatprep.subr.bf16.mxu1 %v4064_v30  ;;  %v221_v23 = vld [vmem:[#allocation6 + $0x438] sm:$0xff]  ;;  %v4120_v24 = vcombine.high %v209_v13, %v213_v16  ;;  %v4119_v30 = vcombine.low %v209_v13, %v213_v16  ;;  %v272_v13 = vld [vmem:[#allocation6 + $0x5d0] sm:$0xff] }
  0xed   :  { %v4127_v36 = vcombine.low %v217_v22, %v221_v23  ;;  %v273_v16 = vld [vmem:[#allocation6 + $0x5d8] sm:$0xff] }
  0xef   :  { %1853 = vmatpush1.bf16.msra.mxu0 %v4061_v32  ;;  %1939 = vmatpush1.bf16.msra.mxu1 %v4063_v33  ;;  %v225_v32 = vld [vmem:[#allocation6 + $0x458] sm:$0xff] }
  0xf0   :  { %1854 = vmatprep.subr.bf16.mxu0 %v4070_v34  ;;  %1940 = vmatprep.subr.bf16.mxu1 %v4072_v38  ;;  %v229_v33 = vld [vmem:[#allocation6 + $0x478] sm:$0xff]  ;;  %v4128_v34 = vcombine.high %v217_v22, %v221_v23  ;;  %v280_v22 = vld [vmem:[#allocation6 + $0x610] sm:$0xff] }
  0xf1   :  { %v4136_v38 = vcombine.high %v225_v32, %v229_v33  ;;  %v4135_v44 = vcombine.low %v225_v32, %v229_v33  ;;  %v284_v23 = vld [vmem:[#allocation6 + $0x630] sm:$0xff] }
  0xf2   :  { %v288_v32 = vld [vmem:[#allocation6 + $0x650] sm:$0xff] }
  0xf3   :  { %1855 = vmatpush1.bf16.msra.mxu0 %v4069_v40  ;;  %1941 = vmatpush1.bf16.msra.mxu1 %v4071_v41  ;;  %v236_v40 = vld [vmem:[#allocation6 + $0x4b0] sm:$0xff]  ;;  %v233_v41 = vld [vmem:[#allocation6 + $0x498] sm:$0xff] }
  0xf4   :  { %1856 = vmatprep.subr.bf16.mxu0 %v4078_v42  ;;  %1942 = vmatprep.subr.bf16.mxu1 %v4080_v46  ;;  %v237_v42 = vld [vmem:[#allocation6 + $0x4b8] sm:$0xff]  ;;  %v4142_v45 = vcombine.high %v232_v39, %v236_v40  ;;  %v4141_v51 = vcombine.low %v232_v39, %v236_v40  ;;  %v292_v33 = vld [vmem:[#allocation6 + $0x670] sm:$0xff] }
  0xf5   :  { %v4144_v46 = vcombine.high %v233_v41, %v237_v42  ;;  %v296_v40 = vld [vmem:[#allocation6 + $0x690] sm:$0xff] }
  0xf7   :  { %1857 = vmatpush1.bf16.msra.mxu0 %v4077_v48  ;;  %1943 = vmatpush1.bf16.msra.mxu1 %v4079_v49  ;;  %v244_v48 = vld [vmem:[#allocation6 + $0x4f0] sm:$0xff]  ;;  %v241_v49 = vld [vmem:[#allocation6 + $0x4d8] sm:$0xff] }
  0xf8   :  { %1858 = vmatprep.subr.bf16.mxu0 %v4086_v50  ;;  %1944 = vmatprep.subr.bf16.mxu1 %v4088_v54  ;;  %v245_v50 = vld [vmem:[#allocation6 + $0x4f8] sm:$0xff]  ;;  %v4150_v52 = vcombine.high %v240_v47, %v244_v48  ;;  %v248_v54 = vld [vmem:[#allocation6 + $0x510] sm:$0xff] }
  0xf9   :  { %v4152_v53 = vcombine.high %v241_v49, %v245_v50  ;;  %v4151_v59 = vcombine.low %v241_v49, %v245_v50  ;;  %v4158_v60 = vcombine.high %v248_v54, %v252_v55  ;;  %v308_v49 = vld [vmem:[#allocation6 + $0x6f0] sm:$0xff]  ;;  %v305_v50 = vld [vmem:[#allocation6 + $0x6d8] sm:$0xff] }
  0xfb   :  { %1859 = vmatpush1.bf16.msra.mxu0 %v4085_v56  ;;  %1945 = vmatpush1.bf16.msra.mxu1 %v4087_v58  ;;  %v249_v56 = vld [vmem:[#allocation6 + $0x518] sm:$0xff] }
  0xfc   :  { %1860 = vmatprep.subr.bf16.mxu0 %v4094_v57  ;;  %1946 = vmatprep.subr.bf16.mxu1 %v4096_v62  ;;  %v253_v58 = vld [vmem:[#allocation6 + $0x538] sm:$0xff]  ;;  %v4149_v57 = vcombine.low %v240_v47, %v244_v48  ;;  %v260_v62 = vld [vmem:[#allocation6 + $0x570] sm:$0xff] }
  0xfd   :  { %v4166_v3 = vcombine.high %v256_v61, %v260_v62  ;;  %v304_v48 = vld [vmem:[#allocation6 + $0x6d0] sm:$0xff] }
  0xff   :  { %1861 = vmatpush1.bf16.msra.mxu0 %v4093_v0  ;;  %1947 = vmatpush1.bf16.msra.mxu1 %v4095_v1  ;;  %v261_v0 = vld [vmem:[#allocation6 + $0x578] sm:$0xff]  ;;  %v4157_v1 = vcombine.low %v248_v54, %v252_v55  ;;  %v312_v55 = vld [vmem:[#allocation6 + $0x710] sm:$0xff] }
 0x100   :  { %1862 = vmatprep.subr.bf16.mxu0 %v4102_v2  ;;  %1948 = vmatprep.subr.bf16.mxu1 %v4104_v6  ;;  %v4159_v2 = vcombine.low %v249_v56, %v253_v58  ;;  %v4168_v4 = vcombine.high %v257_v63, %v261_v0  ;;  %v268_v6 = vld [vmem:[#allocation6 + $0x5b0] sm:$0xff] }
 0x101   :  { %v4174_v11 = vcombine.high %v264_v5, %v268_v6  ;;  %v4173_v18 = vcombine.low %v264_v5, %v268_v6  ;;  %v328_v6 = vld [vmem:[#allocation6 + $0x790] sm:$0xff] }
 0x103   :  { %1863 = vmatpush1.bf16.msra.mxu0 %v4101_v8  ;;  %1949 = vmatpush1.bf16.msra.mxu1 %v4103_v9  ;;  %v269_v8 = vld [vmem:[#allocation6 + $0x5b8] sm:$0xff]  ;;  %v4165_v9 = vcombine.low %v256_v61, %v260_v62  ;;  %v320_v62 = vld [vmem:[#allocation6 + $0x750] sm:$0xff] }
 0x104   :  { %1864 = vmatprep.subr.bf16.mxu0 %v4110_v10  ;;  %1950 = vmatprep.subr.bf16.mxu1 %v4112_v14  ;;  %v4167_v10 = vcombine.low %v257_v63, %v261_v0  ;;  %v4176_v12 = vcombine.high %v265_v7, %v269_v8  ;;  %v276_v14 = vld [vmem:[#allocation6 + $0x5f0] sm:$0xff]  ;;  %v4175_v19 = vcombine.low %v265_v7, %v269_v8  ;;  %v321_v0 = vld [vmem:[#allocation6 + $0x758] sm:$0xff] }
 0x105   :  { %v4181_v27 = vcombine.low %v272_v13, %v276_v14  ;;  %v324_v63 = vld [vmem:[#allocation6 + $0x770] sm:$0xff]  ;;  %v329_v8 = vld [vmem:[#allocation6 + $0x798] sm:$0xff] }
 0x106   :  { %v332_v7 = vld [vmem:[#allocation6 + $0x7b0] sm:$0xff] }
 0x107   :  { %1865 = vmatpush1.bf16.msra.mxu0 %v4109_v17  ;;  %1951 = vmatpush1.bf16.msra.mxu1 %v4111_v20  ;;  %v277_v17 = vld [vmem:[#allocation6 + $0x5f8] sm:$0xff]  ;;  %v4182_v20 = vcombine.high %v272_v13, %v276_v14  ;;  %v336_v14 = vld [vmem:[#allocation6 + $0x7d0] sm:$0xff] }
 0x108   :  { %1866 = vmatprep.subr.bf16.mxu0 %v4118_v21  ;;  %1952 = vmatprep.subr.bf16.mxu1 %v4120_v24  ;;  %v4184_v21 = vcombine.high %v273_v16, %v277_v17  ;;  %v281_v24 = vld [vmem:[#allocation6 + $0x618] sm:$0xff]  ;;  %v4183_v29 = vcombine.low %v273_v16, %v277_v17  ;;  %v340_v16 = vld [vmem:[#allocation6 + $0x7f0] sm:$0xff] }
 0x109   :  { %v337_v17 = vld [vmem:[#allocation6 + $0x7d8] sm:$0xff] }
 0x10b   :  { %1867 = vmatpush1.bf16.msra.mxu0 %v4117_v26  ;;  %1953 = vmatpush1.bf16.msra.mxu1 %v4119_v30  ;;  %v285_v26 = vld [vmem:[#allocation6 + $0x638] sm:$0xff]  ;;  %v4190_v30 = vcombine.high %v280_v22, %v284_v23 }
 0x10c   :  { %1879 = vmatprep.subr.bf16.mxu0 %v4126_v31  ;;  %1965 = vmatprep.subr.bf16.mxu1 %v4128_v34  ;;  %v4192_v31 = vcombine.high %v281_v24, %v285_v26  ;;  %v289_v34 = vld [vmem:[#allocation6 + $0x658] sm:$0xff] }
 0x10e   :  { %1869 = vmatmul.mubr.bf16.vlgmr.msra.gmra.mrb[4].mxu0 %v5191_v15  ;;  %1955 = vmatmul.mubr.bf16.vlgmr.msra.gmra.mrb[4].mxu1 %v5191_v15  ;;  %v4143_v15 = vcombine.low %v233_v41, %v237_v42  ;;  %v300_v41 = vld [vmem:[#allocation6 + $0x6b0] sm:$0xff]  ;;  %v297_v42 = vld [vmem:[#allocation6 + $0x698] sm:$0xff] }
 0x10f   :  { %1880 = vmatpush1.bf16.msra.mxu0 %v4125_v35  ;;  %1966 = vmatpush1.bf16.msra.mxu1 %v4127_v36  ;;  %v293_v35 = vld [vmem:[#allocation6 + $0x678] sm:$0xff]  ;;  %v4189_v36 = vcombine.low %v280_v22, %v284_v23  ;;  %v4245_v23 = vcombine.low %v336_v14, %v340_v16 }
 0x110   :  { %1881 = vmatprep.subr.bf16.mxu0 %v4134_v37  ;;  %1967 = vmatprep.subr.bf16.mxu1 %v4136_v38  ;;  %v4191_v37 = vcombine.low %v281_v24, %v285_v26  ;;  %v4198_v38 = vcombine.high %v288_v32, %v292_v33  ;;  %v4200_v39 = vcombine.high %v289_v34, %v293_v35  ;;  %v4580_v26 = vld [vmem:[#allocation9 + $0x4] ss:$16 sps:$4 sm:$0xff]  }
 0x111   :  { %1911 = vmatprep.mubr.bf16.mxu0 %v5193_v25  ;;  %1997 = vmatprep.mubr.bf16.mxu1 %v5193_v25  ;;  %v4160_v25 = vcombine.high %v249_v56, %v253_v58  ;;  %v316_v56 = vld [vmem:[#allocation6 + $0x730] sm:$0xff]  ;;  %v313_v58 = vld [vmem:[#allocation6 + $0x718] sm:$0xff] }
 0x113   :  { %1882 = vmatpush1.bf16.msra.mxu0 %v4133_v43  ;;  %1968 = vmatpush1.bf16.msra.mxu1 %v4135_v44  ;;  %v301_v43 = vld [vmem:[#allocation6 + $0x6b8] sm:$0xff]  ;;  %v4197_v44 = vcombine.low %v288_v32, %v292_v33  ;;  %v4589_v32 = vld [vmem:[#allocation9 + $0x2c] ss:$16 sps:$4 sm:$0xff]  }
 0x114   :  { %1883 = vmatprep.subr.bf16.mxu0 %v4142_v45  ;;  %1969 = vmatprep.subr.bf16.mxu1 %v4144_v46  ;;  %v4199_v45 = vcombine.low %v289_v34, %v293_v35  ;;  %v4206_v46 = vcombine.high %v296_v40, %v300_v41  ;;  %v4208_v47 = vcombine.high %v297_v42, %v301_v43  ;;  %v4584_v33 = vld [vmem:[#allocation9 + $0x20] ss:$16 sps:$4 sm:$0xff]   ;;  %v4587_v34 = vld [vmem:[#allocation9 + $0x28] ss:$16 sps:$4 sm:$0xff]   ;;  %v4592_v35 = vld [vmem:[#allocation9 + $0x44] ss:$16 sps:$4 sm:$0xff]  }
 0x117   :  { %1884 = vmatpush1.bf16.msra.mxu0 %v4141_v51  ;;  %1970 = vmatpush1.bf16.msra.mxu1 %v4143_v15  ;;  %v309_v51 = vld [vmem:[#allocation6 + $0x6f8] sm:$0xff]  ;;  %v4205_v15 = vcombine.low %v296_v40, %v300_v41  ;;  %v4601_v40 = vld [vmem:[#allocation9 + $0x6c] ss:$16 sps:$4 sm:$0xff]  }
 0x118   :  { %1885 = vmatprep.subr.bf16.mxu0 %v4150_v52  ;;  %1971 = vmatprep.subr.bf16.mxu1 %v4152_v53  ;;  %v4207_v52 = vcombine.low %v297_v42, %v301_v43  ;;  %v4214_v53 = vcombine.high %v304_v48, %v308_v49  ;;  %v4216_v54 = vcombine.high %v305_v50, %v309_v51  ;;  %v4596_v41 = vld [vmem:[#allocation9 + $0x60] ss:$16 sps:$4 sm:$0xff]   ;;  %v4604_v42 = vld [vmem:[#allocation9 + $0x84] ss:$16 sps:$4 sm:$0xff]   ;;  %v4607_v43 = vld [vmem:[#allocation9 + $0x8c] ss:$16 sps:$4 sm:$0xff]  }
 0x11b   :  { %1886 = vmatpush1.bf16.msra.mxu0 %v4149_v57  ;;  %1972 = vmatpush1.bf16.msra.mxu1 %v4151_v59  ;;  %v317_v57 = vld [vmem:[#allocation6 + $0x738] sm:$0xff]  ;;  %v4213_v59 = vcombine.low %v304_v48, %v308_v49  ;;  %v4611_v49 = vld [vmem:[#allocation9 + $0xa8] ss:$16 sps:$4 sm:$0xff]  }
 0x11c   :  { %1887 = vmatprep.subr.bf16.mxu0 %v4158_v60  ;;  %1973 = vmatprep.subr.bf16.mxu1 %v4160_v25  ;;  %v4215_v60 = vcombine.low %v305_v50, %v309_v51  ;;  %v4222_v25 = vcombine.high %v312_v55, %v316_v56  ;;  %v4224_v61 = vcombine.high %v313_v58, %v317_v57  ;;  %v4608_v48 = vld [vmem:[#allocation9 + $0xa0] ss:$16 sps:$4 sm:$0xff]   ;;  %v4616_v50 = vld [vmem:[#allocation9 + $0xc4] ss:$16 sps:$4 sm:$0xff]   ;;  %v4619_v51 = vld [vmem:[#allocation9 + $0xcc] ss:$16 sps:$4 sm:$0xff]  }
 0x11f   :  { %1888 = vmatpush1.bf16.msra.mxu0 %v4157_v1  ;;  %1974 = vmatpush1.bf16.msra.mxu1 %v4159_v2  ;;  %v325_v1 = vld [vmem:[#allocation6 + $0x778] sm:$0xff]  ;;  %v4221_v2 = vcombine.low %v312_v55, %v316_v56  ;;  %v4623_v56 = vld [vmem:[#allocation9 + $0xe8] ss:$16 sps:$4 sm:$0xff]  }
 0x120   :  { %1889 = vmatprep.subr.bf16.mxu0 %v4166_v3  ;;  %1975 = vmatprep.subr.bf16.mxu1 %v4168_v4  ;;  %v4223_v3 = vcombine.low %v313_v58, %v317_v57  ;;  %v4230_v4 = vcombine.high %v320_v62, %v324_v63  ;;  %v4232_v5 = vcombine.high %v321_v0, %v325_v1  ;;  %v4620_v55 = vld [vmem:[#allocation9 + $0xe0] ss:$16 sps:$4 sm:$0xff]   ;;  %v4628_v58 = vld [vmem:[#allocation9 + $0x104] ss:$16 sps:$4 sm:$0xff]   ;;  %v4631_v57 = vld [vmem:[#allocation9 + $0x10c] ss:$16 sps:$4 sm:$0xff]  }
 0x123   :  { %1890 = vmatpush1.bf16.msra.mxu0 %v4165_v9  ;;  %1976 = vmatpush1.bf16.msra.mxu1 %v4167_v10  ;;  %v333_v9 = vld [vmem:[#allocation6 + $0x7b8] sm:$0xff]  ;;  %v4229_v10 = vcombine.low %v320_v62, %v324_v63  ;;  %v4635_v63 = vld [vmem:[#allocation9 + $0x128] ss:$16 sps:$4 sm:$0xff]  }
 0x124   :  { %1891 = vmatprep.subr.bf16.mxu0 %v4174_v11  ;;  %1977 = vmatprep.subr.bf16.mxu1 %v4176_v12  ;;  %v4231_v11 = vcombine.low %v321_v0, %v325_v1  ;;  %v4238_v12 = vcombine.high %v328_v6, %v332_v7  ;;  %v4240_v13 = vcombine.high %v329_v8, %v333_v9  ;;  %v4632_v62 = vld [vmem:[#allocation9 + $0x120] ss:$16 sps:$4 sm:$0xff]   ;;  %v4640_v0 = vld [vmem:[#allocation9 + $0x144] ss:$16 sps:$4 sm:$0xff]   ;;  %v4643_v1 = vld [vmem:[#allocation9 + $0x14c] ss:$16 sps:$4 sm:$0xff]  }
 0x127   :  { %1892 = vmatpush1.bf16.msra.mxu0 %v4173_v18  ;;  %1978 = vmatpush1.bf16.msra.mxu1 %v4175_v19  ;;  %v341_v18 = vld [vmem:[#allocation6 + $0x7f8] sm:$0xff]  ;;  %v4237_v19 = vcombine.low %v328_v6, %v332_v7  ;;  %v4647_v7 = vld [vmem:[#allocation9 + $0x168] ss:$16 sps:$4 sm:$0xff]  }
 0x128   :  { %1893 = vmatprep.subr.bf16.mxu0 %v4182_v20  ;;  %1979 = vmatprep.subr.bf16.mxu1 %v4184_v21  ;;  %v4239_v20 = vcombine.low %v329_v8, %v333_v9  ;;  %v4246_v21 = vcombine.high %v336_v14, %v340_v16  ;;  %v4248_v22 = vcombine.high %v337_v17, %v341_v18  ;;  %v4644_v6 = vld [vmem:[#allocation9 + $0x160] ss:$16 sps:$4 sm:$0xff]   ;;  %v4652_v8 = vld [vmem:[#allocation9 + $0x184] ss:$16 sps:$4 sm:$0xff]   ;;  %v4655_v9 = vld [vmem:[#allocation9 + $0x18c] ss:$16 sps:$4 sm:$0xff]  }
 0x129   :  { %v4247_v24 = vcombine.low %v337_v17, %v341_v18  ;;  %v4656_v14 = vld [vmem:[#allocation9 + $0x1a0] ss:$16 sps:$4 sm:$0xff]   ;;  %v4659_v16 = vld [vmem:[#allocation9 + $0x1a8] ss:$16 sps:$4 sm:$0xff]   ;;  %v4664_v17 = vld [vmem:[#allocation9 + $0x1c4] ss:$16 sps:$4 sm:$0xff]  }
 0x12a   :  { %v4667_v18 = vld [vmem:[#allocation9 + $0x1cc] ss:$16 sps:$4 sm:$0xff]  }
 0x12b   :  { %1894 = vmatpush1.bf16.msra.mxu0 %v4181_v27  ;;  %1980 = vmatpush1.bf16.msra.mxu1 %v4183_v29  ;;  %v4583_v27 = vld [vmem:[#allocation9 + $0xc] ss:$16 sps:$4 sm:$0xff]   ;;  %v4578_v29 = vld [vmem:[#allocation9] ss:$16 sps:$4 sm:$0xff]  }
 0x12c   :  { %1895 = vmatprep.subr.bf16.mxu0 %v4190_v30  ;;  %1981 = vmatprep.subr.bf16.mxu1 %v4192_v31  ;;  %v4581_v30 = vld [vmem:[#allocation9 + $0x8] ss:$16 sps:$4 sm:$0xff]   ;;  %v4586_v31 = vld [vmem:[#allocation9 + $0x24] ss:$16 sps:$4 sm:$0xff]  }
 0x12f   :  { %1896 = vmatpush1.bf16.msra.mxu0 %v4189_v36  ;;  %1982 = vmatpush1.bf16.msra.mxu1 %v4191_v37  ;;  %v4595_v36 = vld [vmem:[#allocation9 + $0x4c] ss:$16 sps:$4 sm:$0xff]   ;;  %v4590_v37 = vld [vmem:[#allocation9 + $0x40] ss:$16 sps:$4 sm:$0xff]  }
 0x130   :  { %1897 = vmatprep.subr.bf16.mxu0 %v4198_v38  ;;  %1983 = vmatprep.subr.bf16.mxu1 %v4200_v39  ;;  %v4593_v38 = vld [vmem:[#allocation9 + $0x48] ss:$16 sps:$4 sm:$0xff]   ;;  %v4598_v39 = vld [vmem:[#allocation9 + $0x64] ss:$16 sps:$4 sm:$0xff]  }
 0x133   :  { %1898 = vmatpush1.bf16.msra.mxu0 %v4197_v44  ;;  %1984 = vmatpush1.bf16.msra.mxu1 %v4199_v45  ;;  %v4602_v44 = vld [vmem:[#allocation9 + $0x80] ss:$16 sps:$4 sm:$0xff]   ;;  %v4605_v45 = vld [vmem:[#allocation9 + $0x88] ss:$16 sps:$4 sm:$0xff]  }
 0x134   :  { %1899 = vmatprep.subr.bf16.mxu0 %v4206_v46  ;;  %1985 = vmatprep.subr.bf16.mxu1 %v4208_v47  ;;  %v4610_v46 = vld [vmem:[#allocation9 + $0xa4] ss:$16 sps:$4 sm:$0xff]   ;;  %v4613_v47 = vld [vmem:[#allocation9 + $0xac] ss:$16 sps:$4 sm:$0xff]  }
 0x137   :  { %1900 = vmatpush1.bf16.msra.mxu0 %v4205_v15  ;;  %1986 = vmatpush1.bf16.msra.mxu1 %v4207_v52  ;;  %v4614_v15 = vld [vmem:[#allocation9 + $0xc0] ss:$16 sps:$4 sm:$0xff]   ;;  %v4617_v52 = vld [vmem:[#allocation9 + $0xc8] ss:$16 sps:$4 sm:$0xff]  }
 0x138   :  { %1901 = vmatprep.subr.bf16.mxu0 %v4214_v53  ;;  %1987 = vmatprep.subr.bf16.mxu1 %v4216_v54  ;;  %v4622_v53 = vld [vmem:[#allocation9 + $0xe4] ss:$16 sps:$4 sm:$0xff]   ;;  %v4625_v54 = vld [vmem:[#allocation9 + $0xec] ss:$16 sps:$4 sm:$0xff]  }
 0x13b   :  { %1902 = vmatpush1.bf16.msra.mxu0 %v4213_v59  ;;  %1988 = vmatpush1.bf16.msra.mxu1 %v4215_v60  ;;  %v4626_v59 = vld [vmem:[#allocation9 + $0x100] ss:$16 sps:$4 sm:$0xff]   ;;  %v4629_v60 = vld [vmem:[#allocation9 + $0x108] ss:$16 sps:$4 sm:$0xff]  }
 0x13c   :  { %1903 = vmatprep.subr.bf16.mxu0 %v4222_v25  ;;  %1989 = vmatprep.subr.bf16.mxu1 %v4224_v61  ;;  %v4634_v25 = vld [vmem:[#allocation9 + $0x124] ss:$16 sps:$4 sm:$0xff]   ;;  %v4637_v61 = vld [vmem:[#allocation9 + $0x12c] ss:$16 sps:$4 sm:$0xff]  }
 0x13f   :  { %1904 = vmatpush1.bf16.msra.mxu0 %v4221_v2  ;;  %1990 = vmatpush1.bf16.msra.mxu1 %v4223_v3  ;;  %v4638_v2 = vld [vmem:[#allocation9 + $0x140] ss:$16 sps:$4 sm:$0xff]   ;;  %v4641_v3 = vld [vmem:[#allocation9 + $0x148] ss:$16 sps:$4 sm:$0xff]  }
 0x140   :  { %1905 = vmatprep.subr.bf16.mxu0 %v4230_v4  ;;  %1991 = vmatprep.subr.bf16.mxu1 %v4232_v5  ;;  %v4646_v4 = vld [vmem:[#allocation9 + $0x164] ss:$16 sps:$4 sm:$0xff]   ;;  %v4649_v5 = vld [vmem:[#allocation9 + $0x16c] ss:$16 sps:$4 sm:$0xff]  }
 0x143   :  { %1906 = vmatpush1.bf16.msra.mxu0 %v4229_v10  ;;  %1992 = vmatpush1.bf16.msra.mxu1 %v4231_v11  ;;  %v4650_v10 = vld [vmem:[#allocation9 + $0x180] ss:$16 sps:$4 sm:$0xff]   ;;  %v4653_v11 = vld [vmem:[#allocation9 + $0x188] ss:$16 sps:$4 sm:$0xff]  }
 0x144   :  { %1907 = vmatprep.subr.bf16.mxu0 %v4238_v12  ;;  %1993 = vmatprep.subr.bf16.mxu1 %v4240_v13  ;;  %v4658_v12 = vld [vmem:[#allocation9 + $0x1a4] ss:$16 sps:$4 sm:$0xff]   ;;  %v4661_v13 = vld [vmem:[#allocation9 + $0x1ac] ss:$16 sps:$4 sm:$0xff]  }
 0x147   :  { %1908 = vmatpush1.bf16.msra.mxu0 %v4237_v19  ;;  %1994 = vmatpush1.bf16.msra.mxu1 %v4239_v20  ;;  %v4662_v19 = vld [vmem:[#allocation9 + $0x1c0] ss:$16 sps:$4 sm:$0xff]   ;;  %v4665_v20 = vld [vmem:[#allocation9 + $0x1c8] ss:$16 sps:$4 sm:$0xff]  }
 0x148   :  { %1909 = vmatprep.subr.bf16.mxu0 %v4246_v21  ;;  %1995 = vmatprep.subr.bf16.mxu1 %v4248_v22  ;;  %v4670_v21 = vld [vmem:[#allocation9 + $0x1e4] ss:$16 sps:$4 sm:$0xff]   ;;  %v4673_v22 = vld [vmem:[#allocation9 + $0x1ec] ss:$16 sps:$4 sm:$0xff]  }
 0x14b   :  { %1910 = vmatpush1.bf16.msra.mxu0 %v4245_v23  ;;  %1996 = vmatpush1.bf16.msra.mxu1 %v4247_v24  ;;  %v4668_v23 = vld [vmem:[#allocation9 + $0x1e0] ss:$16 sps:$4 sm:$0xff]   ;;  %v4671_v24 = vld [vmem:[#allocation9 + $0x1e8] ss:$16 sps:$4 sm:$0xff]  }
 0x14c   :  { %3622 = vmatprep.subr.bf16.mxu0 %v4580_v26  ;;  %3794 = vmatprep.subr.bf16.mxu1 %v4583_v27  ;;  %v4676_v26 = vld [vmem:[#allocation9 + $0x204] ss:$16 sps:$4 sm:$0xff]   ;;  %v4679_v27 = vld [vmem:[#allocation9 + $0x20c] ss:$16 sps:$4 sm:$0xff]  }
 0x14e   :  { %1912 = vmatmul.mubr.bf16.vlgmr.msra.gmra.mrb[4].mxu0 %v5199_v28  ;;  %1998 = vmatmul.mubr.bf16.vlgmr.msra.gmra.mrb[4].mxu1 %v5199_v28  ;;  %v4599_v28 = vld [vmem:[#allocation9 + $0x68] ss:$16 sps:$4 sm:$0xff]  }
 0x14f   :  { %3623 = vmatpush1.bf16.msra.mxu0 %v4578_v29  ;;  %3795 = vmatpush1.bf16.msra.mxu1 %v4581_v30  ;;  %v344_v29 = vlaneseq }
 0x150   :  { %3624 = vmatprep.subr.bf16.mxu0 %v4586_v31  ;;  %3796 = vmatprep.subr.bf16.mxu1 %v4589_v32  ;;  %v5214_v32 = vld [vmem:[#allocation8] sm:$0xff] }
 0x151   :  { %v5211_v30 = vshrl.u32 %v344_v29, 7  ;;  %v4713_v29 = vld [vmem:[#allocation9 + $0x2c8] ss:$16 sps:$4 sm:$0xff]  }
 0x153   :  { %3625 = vmatpush1.bf16.msra.mxu0 %v4584_v33  ;;  %3797 = vmatpush1.bf16.msra.mxu1 %v4587_v34  ;;  %v346_v31 = vsub.s32 0, %v5211_v30  ;;  %v354_v33 = vsub.s32 2, %v5211_v30  ;;  %v350_v34 = vsub.s32 1, %v5211_v30 }
 0x154   :  { %3626 = vmatprep.subr.bf16.mxu0 %v4592_v35  ;;  %3798 = vmatprep.subr.bf16.mxu1 %v4595_v36  ;;  %v358_v35 = vsub.s32 3, %v5211_v30 }
 0x155   :  { %v347_v36 = vrot.slane %v5214_v32, %v346_v31 }
 0x157   :  { %3627 = vmatpush1.bf16.msra.mxu0 %v4590_v37  ;;  %3799 = vmatpush1.bf16.msra.mxu1 %v4593_v38  ;;  %v355_v37 = vrot.slane %v5214_v32, %v354_v33  ;;  %v351_v38 = vrot.slane %v5214_v32, %v350_v34 }
 0x158   :  { %3628 = vmatprep.subr.bf16.mxu0 %v4598_v39  ;;  %3800 = vmatprep.subr.bf16.mxu1 %v4601_v40  ;;  %v359_v39 = vrot.slane %v5214_v32, %v358_v35 }
 0x15b   :  { %3629 = vmatpush1.bf16.msra.mxu0 %v4596_v41  ;;  %3801 = vmatpush1.bf16.msra.mxu1 %v4599_v28 }
 0x15c   :  { %3630 = vmatprep.subr.bf16.mxu0 %v4604_v42  ;;  %3802 = vmatprep.subr.bf16.mxu1 %v4607_v43 }
 0x15f   :  { %3631 = vmatpush1.bf16.msra.mxu0 %v4602_v44  ;;  %3803 = vmatpush1.bf16.msra.mxu1 %v4605_v45 }
 0x160   :  { %3632 = vmatprep.subr.bf16.mxu0 %v4610_v46  ;;  %3804 = vmatprep.subr.bf16.mxu1 %v4613_v47 }
 0x163   :  { %3633 = vmatpush1.bf16.msra.mxu0 %v4608_v48  ;;  %3805 = vmatpush1.bf16.msra.mxu1 %v4611_v49 }
 0x164   :  { %3634 = vmatprep.subr.bf16.mxu0 %v4616_v50  ;;  %3806 = vmatprep.subr.bf16.mxu1 %v4619_v51 }
 0x167   :  { %3635 = vmatpush1.bf16.msra.mxu0 %v4614_v15  ;;  %3807 = vmatpush1.bf16.msra.mxu1 %v4617_v52 }
 0x168   :  { %3636 = vmatprep.subr.bf16.mxu0 %v4622_v53  ;;  %3808 = vmatprep.subr.bf16.mxu1 %v4625_v54 }
 0x16b   :  { %3637 = vmatpush1.bf16.msra.mxu0 %v4620_v55  ;;  %3809 = vmatpush1.bf16.msra.mxu1 %v4623_v56 }
 0x16c   :  { %3638 = vmatprep.subr.bf16.mxu0 %v4628_v58  ;;  %3810 = vmatprep.subr.bf16.mxu1 %v4631_v57 }
 0x16f   :  { %3639 = vmatpush1.bf16.msra.mxu0 %v4626_v59  ;;  %3811 = vmatpush1.bf16.msra.mxu1 %v4629_v60 }
 0x170   :  { %3640 = vmatprep.subr.bf16.mxu0 %v4634_v25  ;;  %3812 = vmatprep.subr.bf16.mxu1 %v4637_v61 }
 0x173   :  { %3641 = vmatpush1.bf16.msra.mxu0 %v4632_v62  ;;  %3813 = vmatpush1.bf16.msra.mxu1 %v4635_v63 }
 0x174   :  { %3642 = vmatprep.subr.bf16.mxu0 %v4640_v0  ;;  %3814 = vmatprep.subr.bf16.mxu1 %v4643_v1  ;;  %v4674_v0 = vld [vmem:[#allocation9 + $0x200] ss:$16 sps:$4 sm:$0xff]   ;;  %v4677_v1 = vld [vmem:[#allocation9 + $0x208] ss:$16 sps:$4 sm:$0xff]  }
 0x177   :  { %3643 = vmatpush1.bf16.msra.mxu0 %v4638_v2  ;;  %3815 = vmatpush1.bf16.msra.mxu1 %v4641_v3  ;;  %v4682_v3 = vld [vmem:[#allocation9 + $0x224] ss:$16 sps:$4 sm:$0xff]  }
 0x178   :  { %3644 = vmatprep.subr.bf16.mxu0 %v4646_v4  ;;  %3816 = vmatprep.subr.bf16.mxu1 %v4649_v5  ;;  %v4685_v4 = vld [vmem:[#allocation9 + $0x22c] ss:$16 sps:$4 sm:$0xff]   ;;  %v4680_v5 = vld [vmem:[#allocation9 + $0x220] ss:$16 sps:$4 sm:$0xff]  }
 0x17b   :  { %3645 = vmatpush1.bf16.msra.mxu0 %v4644_v6  ;;  %3817 = vmatpush1.bf16.msra.mxu1 %v4647_v7  ;;  %v4683_v6 = vld [vmem:[#allocation9 + $0x228] ss:$16 sps:$4 sm:$0xff]   ;;  %v4688_v7 = vld [vmem:[#allocation9 + $0x244] ss:$16 sps:$4 sm:$0xff]  }
 0x17c   :  { %3646 = vmatprep.subr.bf16.mxu0 %v4652_v8  ;;  %3818 = vmatprep.subr.bf16.mxu1 %v4655_v9  ;;  %v4691_v8 = vld [vmem:[#allocation9 + $0x24c] ss:$16 sps:$4 sm:$0xff]   ;;  %v4686_v9 = vld [vmem:[#allocation9 + $0x240] ss:$16 sps:$4 sm:$0xff]  }
 0x17f   :  { %3647 = vmatpush1.bf16.msra.mxu0 %v4650_v10  ;;  %3819 = vmatpush1.bf16.msra.mxu1 %v4653_v11  ;;  %v4689_v10 = vld [vmem:[#allocation9 + $0x248] ss:$16 sps:$4 sm:$0xff]   ;;  %v4694_v11 = vld [vmem:[#allocation9 + $0x264] ss:$16 sps:$4 sm:$0xff]  }
 0x180   :  { %3648 = vmatprep.subr.bf16.mxu0 %v4658_v12  ;;  %3820 = vmatprep.subr.bf16.mxu1 %v4661_v13  ;;  %v4697_v12 = vld [vmem:[#allocation9 + $0x26c] ss:$16 sps:$4 sm:$0xff]   ;;  %v4692_v13 = vld [vmem:[#allocation9 + $0x260] ss:$16 sps:$4 sm:$0xff]  }
 0x183   :  { %3649 = vmatpush1.bf16.msra.mxu0 %v4656_v14  ;;  %3821 = vmatpush1.bf16.msra.mxu1 %v4659_v16  ;;  %v4695_v14 = vld [vmem:[#allocation9 + $0x268] ss:$16 sps:$4 sm:$0xff]   ;;  %v4700_v16 = vld [vmem:[#allocation9 + $0x284] ss:$16 sps:$4 sm:$0xff]  }
 0x184   :  { %3650 = vmatprep.subr.bf16.mxu0 %v4664_v17  ;;  %3822 = vmatprep.subr.bf16.mxu1 %v4667_v18  ;;  %v4703_v17 = vld [vmem:[#allocation9 + $0x28c] ss:$16 sps:$4 sm:$0xff]   ;;  %v4698_v18 = vld [vmem:[#allocation9 + $0x280] ss:$16 sps:$4 sm:$0xff]  }
 0x187   :  { %3651 = vmatpush1.bf16.msra.mxu0 %v4662_v19  ;;  %3823 = vmatpush1.bf16.msra.mxu1 %v4665_v20  ;;  %v4701_v19 = vld [vmem:[#allocation9 + $0x288] ss:$16 sps:$4 sm:$0xff]   ;;  %v4706_v20 = vld [vmem:[#allocation9 + $0x2a4] ss:$16 sps:$4 sm:$0xff]  }
 0x188   :  { %3652 = vmatprep.subr.bf16.mxu0 %v4670_v21  ;;  %3824 = vmatprep.subr.bf16.mxu1 %v4673_v22  ;;  %v4709_v21 = vld [vmem:[#allocation9 + $0x2ac] ss:$16 sps:$4 sm:$0xff]   ;;  %v4704_v22 = vld [vmem:[#allocation9 + $0x2a0] ss:$16 sps:$4 sm:$0xff]  }
 0x18b   :  { %3653 = vmatpush1.bf16.msra.mxu0 %v4668_v23  ;;  %3825 = vmatpush1.bf16.msra.mxu1 %v4671_v24  ;;  %v4707_v23 = vld [vmem:[#allocation9 + $0x2a8] ss:$16 sps:$4 sm:$0xff]   ;;  %v4712_v24 = vld [vmem:[#allocation9 + $0x2c4] ss:$16 sps:$4 sm:$0xff]  }
 0x18c   :  { %3665 = vmatprep.subr.bf16.mxu0 %v4676_v26  ;;  %3837 = vmatprep.subr.bf16.mxu1 %v4679_v27  ;;  %v4715_v26 = vld [vmem:[#allocation9 + $0x2cc] ss:$16 sps:$4 sm:$0xff]   ;;  %v4710_v27 = vld [vmem:[#allocation9 + $0x2c0] ss:$16 sps:$4 sm:$0xff]  }
 0x1a1   :  { %v1741_v40 = vpop.f32.mrb[0].mxu0  ;;  %v1827_v28 = vpop.f32.mrb[0].mxu1 }
 0x1a2   :  { %v4505_v41 = vadd.f32 %v1741_v40, %v347_v36  ;;  %v1743_v42 = vpop.f32.mrb[1].mxu0  ;;  %v4509_v43 = vadd.f32 %v1827_v28, %v355_v37  ;;  %v1829_v45 = vpop.f32.mrb[1].mxu1  ;;  %v4724_v40 = vld [vmem:[#allocation9 + $0x304] ss:$16 sps:$4 sm:$0xff]   ;;  %v4722_v28 = vld [vmem:[#allocation9 + $0x300] ss:$16 sps:$4 sm:$0xff]  }
 0x1a3   :  { %v4506_v44 = vadd.f32 %v1743_v42, %v351_v38  ;;  %v1745_v46 = vpop.f32.mrb[2].mxu0  ;;  %v4510_v47 = vadd.f32 %v1829_v45, %v359_v39  ;;  %v1831_v49 = vpop.f32.mrb[2].mxu1  ;;  %v4725_v42 = vld [vmem:[#allocation9 + $0x308] ss:$16 sps:$4 sm:$0xff]   ;;  %v4728_v45 = vld [vmem:[#allocation9 + $0x320] ss:$16 sps:$4 sm:$0xff]  }
 0x1a4   :  { %v4507_v48 = vadd.f32 %v1745_v46, %v347_v36  ;;  %v1747_v50 = vpop.f32.mrb[3].mxu0  ;;  %v4511_v51 = vadd.f32 %v1831_v49, %v355_v37  ;;  %v1833_v52 = vpop.f32.mrb[3].mxu1  ;;  %v2008_v53 = vmax.f32 %v4505_v41, 0.0  ;;  %v2010_v56 = vmax.f32 %v4509_v43, 0.0  ;;  %v4718_v36 = vld [vmem:[#allocation9 + $0x2e4] ss:$16 sps:$4 sm:$0xff]  }
 0x1a5   :  { %v4508_v15 = vadd.f32 %v1747_v50, %v351_v38  ;;  %v4512_v55 = vadd.f32 %v1833_v52, %v359_v39  ;;  %v2009_v58 = vmax.f32 %v4506_v44, 0.0  ;;  %v2011_v60 = vmax.f32 %v4510_v47, 0.0  ;;  %v4721_v37 = vld [vmem:[#allocation9 + $0x2ec] ss:$16 sps:$4 sm:$0xff]   ;;  %v4716_v38 = vld [vmem:[#allocation9 + $0x2e0] ss:$16 sps:$4 sm:$0xff]  }
 0x1a6   :  { %v2016_v54 = vmax.f32 %v4507_v48, 0.0  ;;  %v2018_v57 = vmax.f32 %v4511_v51, 0.0  ;;  %v4719_v39 = vld [vmem:[#allocation9 + $0x2e8] ss:$16 sps:$4 sm:$0xff]   ;;  %v4727_v41 = vld [vmem:[#allocation9 + $0x30c] ss:$16 sps:$4 sm:$0xff]  }
 0x1a7   :  { %v2017_v59 = vmax.f32 %v4508_v15, 0.0  ;;  %v2019_v61 = vmax.f32 %v4512_v55, 0.0  ;;  %v4730_v43 = vld [vmem:[#allocation9 + $0x324] ss:$16 sps:$4 sm:$0xff]   ;;  %v4733_v44 = vld [vmem:[#allocation9 + $0x32c] ss:$16 sps:$4 sm:$0xff]  }
 0x1a8   :  { %v2056_v25 = vpack.c.bf16 %v2016_v54, %v2008_v53  ;;  %v5231_v62 = vpack.c.bf16 %v2018_v57, %v2010_v56  ;;  %v4731_v46 = vld [vmem:[#allocation9 + $0x328] ss:$16 sps:$4 sm:$0xff]   ;;  %v4736_v47 = vld [vmem:[#allocation9 + $0x344] ss:$16 sps:$4 sm:$0xff]   ;;  %v4739_v48 = vld [vmem:[#allocation9 + $0x34c] ss:$16 sps:$4 sm:$0xff]  }
 0x1a9   :  { %v2057_v63 = vpack.c.bf16 %v2017_v59, %v2009_v58  ;;  %v2059_v2 = vpack.c.bf16 %v2019_v61, %v2011_v60  ;;  %v4734_v49 = vld [vmem:[#allocation9 + $0x340] ss:$16 sps:$4 sm:$0xff]   ;;  %v4737_v50 = vld [vmem:[#allocation9 + $0x348] ss:$16 sps:$4 sm:$0xff]   ;;  %v4742_v51 = vld [vmem:[#allocation9 + $0x364] ss:$16 sps:$4 sm:$0xff]  }
 0x1aa   :  { %v4745_v15 = vld [vmem:[#allocation9 + $0x36c] ss:$16 sps:$4 sm:$0xff]   ;;  %v4740_v52 = vld [vmem:[#allocation9 + $0x360] ss:$16 sps:$4 sm:$0xff]   ;;  %v4743_v53 = vld [vmem:[#allocation9 + $0x368] ss:$16 sps:$4 sm:$0xff]  }
 0x1ab   :  { %3654 = vmatprep.mubr.bf16.mxu0 %v2057_v63  ;;  %3826 = vmatprep.mubr.bf16.mxu1 %v2057_v63  ;;  %v4748_v54 = vld [vmem:[#allocation9 + $0x384] ss:$16 sps:$4 sm:$0xff]   ;;  %v4751_v55 = vld [vmem:[#allocation9 + $0x38c] ss:$16 sps:$4 sm:$0xff]   ;;  %v4746_v56 = vld [vmem:[#allocation9 + $0x380] ss:$16 sps:$4 sm:$0xff]  }
 0x1ac   :  { %3655 = vmatmul.mubr.bf16.vlgmr.msra.gmra.mrb[8].mxu0 %v2056_v25  ;;  %3827 = vmatmul.mubr.bf16.vlgmr.msra.gmra.mrb[8].mxu1 %v2056_v25  ;;  %v4749_v58 = vld [vmem:[#allocation9 + $0x388] ss:$16 sps:$4 sm:$0xff]   ;;  %v4754_v57 = vld [vmem:[#allocation9 + $0x3a4] ss:$16 sps:$4 sm:$0xff]   ;;  %v4757_v59 = vld [vmem:[#allocation9 + $0x3ac] ss:$16 sps:$4 sm:$0xff]  }
 0x1ad   :  { %3666 = vmatpush1.bf16.msra.mxu0 %v4674_v0  ;;  %3838 = vmatpush1.bf16.msra.mxu1 %v4677_v1  ;;  %v4752_v60 = vld [vmem:[#allocation9 + $0x3a0] ss:$16 sps:$4 sm:$0xff]   ;;  %v4755_v25 = vld [vmem:[#allocation9 + $0x3a8] ss:$16 sps:$4 sm:$0xff]   ;;  %v4760_v61 = vld [vmem:[#allocation9 + $0x3c4] ss:$16 sps:$4 sm:$0xff]  }
 0x1ae   :  { %3697 = vmatprep.mubr.bf16.mxu0 %v2059_v2  ;;  %3869 = vmatprep.mubr.bf16.mxu1 %v2059_v2  ;;  %v4763_v63 = vld [vmem:[#allocation9 + $0x3cc] ss:$16 sps:$4 sm:$0xff]   ;;  %v4758_v0 = vld [vmem:[#allocation9 + $0x3c0] ss:$16 sps:$4 sm:$0xff]   ;;  %v4761_v1 = vld [vmem:[#allocation9 + $0x3c8] ss:$16 sps:$4 sm:$0xff]  }
 0x1af   :  { %3667 = vmatprep.subr.bf16.mxu0 %v4682_v3  ;;  %3839 = vmatprep.subr.bf16.mxu1 %v4685_v4  ;;  %v4766_v2 = vld [vmem:[#allocation9 + $0x3e4] ss:$16 sps:$4 sm:$0xff]   ;;  %v4769_v3 = vld [vmem:[#allocation9 + $0x3ec] ss:$16 sps:$4 sm:$0xff]   ;;  %v4764_v4 = vld [vmem:[#allocation9 + $0x3e0] ss:$16 sps:$4 sm:$0xff]  }
 0x1b1   :  { %3668 = vmatpush1.bf16.msra.mxu0 %v4680_v5  ;;  %3840 = vmatpush1.bf16.msra.mxu1 %v4683_v6  ;;  %v4767_v5 = vld [vmem:[#allocation9 + $0x3e8] ss:$16 sps:$4 sm:$0xff]   ;;  %v4772_v6 = vld [vmem:[#allocation9 + $0x404] ss:$16 sps:$4 sm:$0xff]  }
 0x1b2   :  { %3669 = vmatprep.subr.bf16.mxu0 %v4688_v7  ;;  %3841 = vmatprep.subr.bf16.mxu1 %v4691_v8  ;;  %v4775_v7 = vld [vmem:[#allocation9 + $0x40c] ss:$16 sps:$4 sm:$0xff]   ;;  %v4770_v8 = vld [vmem:[#allocation9 + $0x400] ss:$16 sps:$4 sm:$0xff]  }
 0x1b5   :  { %3670 = vmatpush1.bf16.msra.mxu0 %v4686_v9  ;;  %3842 = vmatpush1.bf16.msra.mxu1 %v4689_v10  ;;  %v4773_v9 = vld [vmem:[#allocation9 + $0x408] ss:$16 sps:$4 sm:$0xff]   ;;  %v4778_v10 = vld [vmem:[#allocation9 + $0x424] ss:$16 sps:$4 sm:$0xff]  }
 0x1b6   :  { %3671 = vmatprep.subr.bf16.mxu0 %v4694_v11  ;;  %3843 = vmatprep.subr.bf16.mxu1 %v4697_v12  ;;  %v4781_v11 = vld [vmem:[#allocation9 + $0x42c] ss:$16 sps:$4 sm:$0xff]   ;;  %v4776_v12 = vld [vmem:[#allocation9 + $0x420] ss:$16 sps:$4 sm:$0xff]  }
 0x1b9   :  { %3672 = vmatpush1.bf16.msra.mxu0 %v4692_v13  ;;  %3844 = vmatpush1.bf16.msra.mxu1 %v4695_v14  ;;  %v4779_v13 = vld [vmem:[#allocation9 + $0x428] ss:$16 sps:$4 sm:$0xff]   ;;  %v4784_v14 = vld [vmem:[#allocation9 + $0x444] ss:$16 sps:$4 sm:$0xff]  }
 0x1ba   :  { %3673 = vmatprep.subr.bf16.mxu0 %v4700_v16  ;;  %3845 = vmatprep.subr.bf16.mxu1 %v4703_v17  ;;  %v4787_v16 = vld [vmem:[#allocation9 + $0x44c] ss:$16 sps:$4 sm:$0xff]   ;;  %v4782_v17 = vld [vmem:[#allocation9 + $0x440] ss:$16 sps:$4 sm:$0xff]  }
 0x1bd   :  { %3674 = vmatpush1.bf16.msra.mxu0 %v4698_v18  ;;  %3846 = vmatpush1.bf16.msra.mxu1 %v4701_v19  ;;  %v4785_v18 = vld [vmem:[#allocation9 + $0x448] ss:$16 sps:$4 sm:$0xff]   ;;  %v4790_v19 = vld [vmem:[#allocation9 + $0x464] ss:$16 sps:$4 sm:$0xff]  }
 0x1be   :  { %3675 = vmatprep.subr.bf16.mxu0 %v4706_v20  ;;  %3847 = vmatprep.subr.bf16.mxu1 %v4709_v21  ;;  %v4793_v20 = vld [vmem:[#allocation9 + $0x46c] ss:$16 sps:$4 sm:$0xff]   ;;  %v4788_v21 = vld [vmem:[#allocation9 + $0x460] ss:$16 sps:$4 sm:$0xff]  }
 0x1c1   :  { %3676 = vmatpush1.bf16.msra.mxu0 %v4704_v22  ;;  %3848 = vmatpush1.bf16.msra.mxu1 %v4707_v23  ;;  %v4796_v22 = vld [vmem:[#allocation9 + $0x484] ss:$16 sps:$4 sm:$0xff]   ;;  %v4799_v23 = vld [vmem:[#allocation9 + $0x48c] ss:$16 sps:$4 sm:$0xff]  }
 0x1c2   :  { %3677 = vmatprep.subr.bf16.mxu0 %v4712_v24  ;;  %3849 = vmatprep.subr.bf16.mxu1 %v4715_v26  ;;  %v4794_v24 = vld [vmem:[#allocation9 + $0x480] ss:$16 sps:$4 sm:$0xff]   ;;  %v4797_v26 = vld [vmem:[#allocation9 + $0x488] ss:$16 sps:$4 sm:$0xff]  }
 0x1c5   :  { %3678 = vmatpush1.bf16.msra.mxu0 %v4710_v27  ;;  %3850 = vmatpush1.bf16.msra.mxu1 %v4713_v29  ;;  %v4802_v27 = vld [vmem:[#allocation9 + $0x4a4] ss:$16 sps:$4 sm:$0xff]   ;;  %v4805_v29 = vld [vmem:[#allocation9 + $0x4ac] ss:$16 sps:$4 sm:$0xff]  }
 0x1c6   :  { %3679 = vmatprep.subr.bf16.mxu0 %v4718_v36  ;;  %3851 = vmatprep.subr.bf16.mxu1 %v4721_v37  ;;  %v4800_v36 = vld [vmem:[#allocation9 + $0x4a0] ss:$16 sps:$4 sm:$0xff]   ;;  %v4803_v37 = vld [vmem:[#allocation9 + $0x4a8] ss:$16 sps:$4 sm:$0xff]  }
 0x1c9   :  { %3680 = vmatpush1.bf16.msra.mxu0 %v4716_v38  ;;  %3852 = vmatpush1.bf16.msra.mxu1 %v4719_v39  ;;  %v4808_v38 = vld [vmem:[#allocation9 + $0x4c4] ss:$16 sps:$4 sm:$0xff]   ;;  %v4811_v39 = vld [vmem:[#allocation9 + $0x4cc] ss:$16 sps:$4 sm:$0xff]  }
 0x1ca   :  { %3681 = vmatprep.subr.bf16.mxu0 %v4724_v40  ;;  %3853 = vmatprep.subr.bf16.mxu1 %v4727_v41  ;;  %v4806_v40 = vld [vmem:[#allocation9 + $0x4c0] ss:$16 sps:$4 sm:$0xff]   ;;  %v4809_v41 = vld [vmem:[#allocation9 + $0x4c8] ss:$16 sps:$4 sm:$0xff]  }
 0x1cd   :  { %3682 = vmatpush1.bf16.msra.mxu0 %v4722_v28  ;;  %3854 = vmatpush1.bf16.msra.mxu1 %v4725_v42  ;;  %v4814_v28 = vld [vmem:[#allocation9 + $0x4e4] ss:$16 sps:$4 sm:$0xff]   ;;  %v4817_v42 = vld [vmem:[#allocation9 + $0x4ec] ss:$16 sps:$4 sm:$0xff]  }
 0x1ce   :  { %3683 = vmatprep.subr.bf16.mxu0 %v4730_v43  ;;  %3855 = vmatprep.subr.bf16.mxu1 %v4733_v44  ;;  %v4812_v43 = vld [vmem:[#allocation9 + $0x4e0] ss:$16 sps:$4 sm:$0xff]   ;;  %v4815_v44 = vld [vmem:[#allocation9 + $0x4e8] ss:$16 sps:$4 sm:$0xff]  }
 0x1d1   :  { %3684 = vmatpush1.bf16.msra.mxu0 %v4728_v45  ;;  %3856 = vmatpush1.bf16.msra.mxu1 %v4731_v46  ;;  %v4820_v45 = vld [vmem:[#allocation9 + $0x504] ss:$16 sps:$4 sm:$0xff]   ;;  %v4823_v46 = vld [vmem:[#allocation9 + $0x50c] ss:$16 sps:$4 sm:$0xff]  }
 0x1d2   :  { %3685 = vmatprep.subr.bf16.mxu0 %v4736_v47  ;;  %3857 = vmatprep.subr.bf16.mxu1 %v4739_v48  ;;  %v4818_v47 = vld [vmem:[#allocation9 + $0x500] ss:$16 sps:$4 sm:$0xff]   ;;  %v4821_v48 = vld [vmem:[#allocation9 + $0x508] ss:$16 sps:$4 sm:$0xff]  }
 0x1d5   :  { %3686 = vmatpush1.bf16.msra.mxu0 %v4734_v49  ;;  %3858 = vmatpush1.bf16.msra.mxu1 %v4737_v50  ;;  %v4826_v49 = vld [vmem:[#allocation9 + $0x524] ss:$16 sps:$4 sm:$0xff]   ;;  %v4829_v50 = vld [vmem:[#allocation9 + $0x52c] ss:$16 sps:$4 sm:$0xff]  }
 0x1d6   :  { %3687 = vmatprep.subr.bf16.mxu0 %v4742_v51  ;;  %3859 = vmatprep.subr.bf16.mxu1 %v4745_v15  ;;  %v4824_v51 = vld [vmem:[#allocation9 + $0x520] ss:$16 sps:$4 sm:$0xff]   ;;  %v4827_v15 = vld [vmem:[#allocation9 + $0x528] ss:$16 sps:$4 sm:$0xff]  }
 0x1d9   :  { %3688 = vmatpush1.bf16.msra.mxu0 %v4740_v52  ;;  %3860 = vmatpush1.bf16.msra.mxu1 %v4743_v53  ;;  %v4832_v52 = vld [vmem:[#allocation9 + $0x544] ss:$16 sps:$4 sm:$0xff]   ;;  %v4835_v53 = vld [vmem:[#allocation9 + $0x54c] ss:$16 sps:$4 sm:$0xff]  }
 0x1da   :  { %3689 = vmatprep.subr.bf16.mxu0 %v4748_v54  ;;  %3861 = vmatprep.subr.bf16.mxu1 %v4751_v55  ;;  %v4830_v54 = vld [vmem:[#allocation9 + $0x540] ss:$16 sps:$4 sm:$0xff]   ;;  %v4833_v55 = vld [vmem:[#allocation9 + $0x548] ss:$16 sps:$4 sm:$0xff]  }
 0x1dd   :  { %3690 = vmatpush1.bf16.msra.mxu0 %v4746_v56  ;;  %3862 = vmatpush1.bf16.msra.mxu1 %v4749_v58  ;;  %v4838_v56 = vld [vmem:[#allocation9 + $0x564] ss:$16 sps:$4 sm:$0xff]   ;;  %v4841_v58 = vld [vmem:[#allocation9 + $0x56c] ss:$16 sps:$4 sm:$0xff]  }
 0x1de   :  { %3691 = vmatprep.subr.bf16.mxu0 %v4754_v57  ;;  %3863 = vmatprep.subr.bf16.mxu1 %v4757_v59  ;;  %v4836_v57 = vld [vmem:[#allocation9 + $0x560] ss:$16 sps:$4 sm:$0xff]   ;;  %v4839_v59 = vld [vmem:[#allocation9 + $0x568] ss:$16 sps:$4 sm:$0xff]  }
 0x1e1   :  { %3692 = vmatpush1.bf16.msra.mxu0 %v4752_v60  ;;  %3864 = vmatpush1.bf16.msra.mxu1 %v4755_v25  ;;  %v4844_v60 = vld [vmem:[#allocation9 + $0x584] ss:$16 sps:$4 sm:$0xff]   ;;  %v4847_v25 = vld [vmem:[#allocation9 + $0x58c] ss:$16 sps:$4 sm:$0xff]  }
 0x1e2   :  { %3693 = vmatprep.subr.bf16.mxu0 %v4760_v61  ;;  %3865 = vmatprep.subr.bf16.mxu1 %v4763_v63  ;;  %v4842_v61 = vld [vmem:[#allocation9 + $0x580] ss:$16 sps:$4 sm:$0xff]   ;;  %v4845_v63 = vld [vmem:[#allocation9 + $0x588] ss:$16 sps:$4 sm:$0xff]  }
 0x1e5   :  { %3694 = vmatpush1.bf16.msra.mxu0 %v4758_v0  ;;  %3866 = vmatpush1.bf16.msra.mxu1 %v4761_v1  ;;  %v4850_v0 = vld [vmem:[#allocation9 + $0x5a4] ss:$16 sps:$4 sm:$0xff]   ;;  %v4853_v1 = vld [vmem:[#allocation9 + $0x5ac] ss:$16 sps:$4 sm:$0xff]  }
 0x1e6   :  { %3695 = vmatprep.subr.bf16.mxu0 %v4766_v2  ;;  %3867 = vmatprep.subr.bf16.mxu1 %v4769_v3  ;;  %v362_v2 = vsub.s32 4, %v5211_v30  ;;  %v370_v3 = vsub.s32 6, %v5211_v30 }
 0x1e9   :  { %3696 = vmatpush1.bf16.msra.mxu0 %v4764_v4  ;;  %3868 = vmatpush1.bf16.msra.mxu1 %v4767_v5  ;;  %v366_v4 = vsub.s32 5, %v5211_v30  ;;  %v374_v5 = vsub.s32 7, %v5211_v30 }
 0x1ea   :  { %3708 = vmatprep.subr.bf16.mxu0 %v4772_v6  ;;  %3880 = vmatprep.subr.bf16.mxu1 %v4775_v7  ;;  %v4848_v6 = vld [vmem:[#allocation9 + $0x5a0] ss:$16 sps:$4 sm:$0xff]   ;;  %v4851_v7 = vld [vmem:[#allocation9 + $0x5a8] ss:$16 sps:$4 sm:$0xff]  }
 0x1ec   :  { %3698 = vmatmul.mubr.bf16.vlgmr.msra.gmra.mrb[8].mxu0 %v5231_v62  ;;  %3870 = vmatmul.mubr.bf16.vlgmr.msra.gmra.mrb[8].mxu1 %v5231_v62  ;;  %v4791_v62 = vld [vmem:[#allocation9 + $0x468] ss:$16 sps:$4 sm:$0xff]  }
 0x1ed   :  { %3709 = vmatpush1.bf16.msra.mxu0 %v4770_v8  ;;  %3881 = vmatpush1.bf16.msra.mxu1 %v4773_v9  ;;  %v363_v8 = vrot.slane %v5214_v32, %v362_v2  ;;  %v4856_v9 = vld [vmem:[#allocation9 + $0x5c4] ss:$16 sps:$4 sm:$0xff]   ;;  %v4889_v2 = vld [vmem:[#allocation9 + $0x66c] ss:$16 sps:$4 sm:$0xff]  }
 0x1ee   :  { %3710 = vmatprep.subr.bf16.mxu0 %v4778_v10  ;;  %3882 = vmatprep.subr.bf16.mxu1 %v4781_v11  ;;  %v4859_v10 = vld [vmem:[#allocation9 + $0x5cc] ss:$16 sps:$4 sm:$0xff]   ;;  %v371_v11 = vrot.slane %v5214_v32, %v370_v3  ;;  %v4884_v3 = vld [vmem:[#allocation9 + $0x660] ss:$16 sps:$4 sm:$0xff]  }
 0x1f1   :  { %3711 = vmatpush1.bf16.msra.mxu0 %v4776_v12  ;;  %3883 = vmatpush1.bf16.msra.mxu1 %v4779_v13  ;;  %v367_v12 = vrot.slane %v5214_v32, %v366_v4  ;;  %v375_v13 = vrot.slane %v5214_v32, %v374_v5  ;;  %v4887_v4 = vld [vmem:[#allocation9 + $0x668] ss:$16 sps:$4 sm:$0xff]   ;;  %v4892_v5 = vld [vmem:[#allocation9 + $0x684] ss:$16 sps:$4 sm:$0xff]  }
 0x1f2   :  { %3712 = vmatprep.subr.bf16.mxu0 %v4784_v14  ;;  %3884 = vmatprep.subr.bf16.mxu1 %v4787_v16  ;;  %v4854_v16 = vld [vmem:[#allocation9 + $0x5c0] ss:$16 sps:$4 sm:$0xff]  }
 0x1f5   :  { %3713 = vmatpush1.bf16.msra.mxu0 %v4782_v17  ;;  %3885 = vmatpush1.bf16.msra.mxu1 %v4785_v18  ;;  %v4857_v17 = vld [vmem:[#allocation9 + $0x5c8] ss:$16 sps:$4 sm:$0xff]  }
 0x1f6   :  { %3714 = vmatprep.subr.bf16.mxu0 %v4790_v19  ;;  %3886 = vmatprep.subr.bf16.mxu1 %v4793_v20 }
 0x1f9   :  { %3715 = vmatpush1.bf16.msra.mxu0 %v4788_v21  ;;  %3887 = vmatpush1.bf16.msra.mxu1 %v4791_v62  ;;  %v4862_v21 = vld [vmem:[#allocation9 + $0x5e4] ss:$16 sps:$4 sm:$0xff]   ;;  %v4865_v62 = vld [vmem:[#allocation9 + $0x5ec] ss:$16 sps:$4 sm:$0xff]  }
 0x1fa   :  { %3716 = vmatprep.subr.bf16.mxu0 %v4796_v22  ;;  %3888 = vmatprep.subr.bf16.mxu1 %v4799_v23 }
 0x1fd   :  { %3717 = vmatpush1.bf16.msra.mxu0 %v4794_v24  ;;  %3889 = vmatpush1.bf16.msra.mxu1 %v4797_v26 }
 0x1fe   :  { %3718 = vmatprep.subr.bf16.mxu0 %v4802_v27  ;;  %3890 = vmatprep.subr.bf16.mxu1 %v4805_v29 }
 0x201   :  { %3719 = vmatpush1.bf16.msra.mxu0 %v4800_v36  ;;  %3891 = vmatpush1.bf16.msra.mxu1 %v4803_v37 }
 0x202   :  { %3720 = vmatprep.subr.bf16.mxu0 %v4808_v38  ;;  %3892 = vmatprep.subr.bf16.mxu1 %v4811_v39 }
 0x205   :  { %3721 = vmatpush1.bf16.msra.mxu0 %v4806_v40  ;;  %3893 = vmatpush1.bf16.msra.mxu1 %v4809_v41  ;;  %v4860_v40 = vld [vmem:[#allocation9 + $0x5e0] ss:$16 sps:$4 sm:$0xff]   ;;  %v4863_v41 = vld [vmem:[#allocation9 + $0x5e8] ss:$16 sps:$4 sm:$0xff]  }
 0x206   :  { %3722 = vmatprep.subr.bf16.mxu0 %v4814_v28  ;;  %3894 = vmatprep.subr.bf16.mxu1 %v4817_v42 }
 0x209   :  { %3723 = vmatpush1.bf16.msra.mxu0 %v4812_v43  ;;  %3895 = vmatpush1.bf16.msra.mxu1 %v4815_v44  ;;  %v4868_v44 = vld [vmem:[#allocation9 + $0x604] ss:$16 sps:$4 sm:$0xff]  }
 0x20a   :  { %3724 = vmatprep.subr.bf16.mxu0 %v4820_v45  ;;  %3896 = vmatprep.subr.bf16.mxu1 %v4823_v46  ;;  %v4871_v45 = vld [vmem:[#allocation9 + $0x60c] ss:$16 sps:$4 sm:$0xff]  }
 0x20d   :  { %3725 = vmatpush1.bf16.msra.mxu0 %v4818_v47  ;;  %3897 = vmatpush1.bf16.msra.mxu1 %v4821_v48 }
 0x20e   :  { %3726 = vmatprep.subr.bf16.mxu0 %v4826_v49  ;;  %3898 = vmatprep.subr.bf16.mxu1 %v4829_v50 }
 0x211   :  { %3727 = vmatpush1.bf16.msra.mxu0 %v4824_v51  ;;  %3899 = vmatpush1.bf16.msra.mxu1 %v4827_v15 }
 0x212   :  { %3728 = vmatprep.subr.bf16.mxu0 %v4832_v52  ;;  %3900 = vmatprep.subr.bf16.mxu1 %v4835_v53 }
 0x215   :  { %3729 = vmatpush1.bf16.msra.mxu0 %v4830_v54  ;;  %3901 = vmatpush1.bf16.msra.mxu1 %v4833_v55  ;;  %v4866_v54 = vld [vmem:[#allocation9 + $0x600] ss:$16 sps:$4 sm:$0xff]   ;;  %v4869_v55 = vld [vmem:[#allocation9 + $0x608] ss:$16 sps:$4 sm:$0xff]  }
 0x216   :  { %3730 = vmatprep.subr.bf16.mxu0 %v4838_v56  ;;  %3902 = vmatprep.subr.bf16.mxu1 %v4841_v58  ;;  %v4874_v58 = vld [vmem:[#allocation9 + $0x624] ss:$16 sps:$4 sm:$0xff]  }
 0x219   :  { %3731 = vmatpush1.bf16.msra.mxu0 %v4836_v57  ;;  %3903 = vmatpush1.bf16.msra.mxu1 %v4839_v59  ;;  %v4877_v57 = vld [vmem:[#allocation9 + $0x62c] ss:$16 sps:$4 sm:$0xff]   ;;  %v4872_v59 = vld [vmem:[#allocation9 + $0x620] ss:$16 sps:$4 sm:$0xff]  }
 0x21a   :  { %3732 = vmatprep.subr.bf16.mxu0 %v4844_v60  ;;  %3904 = vmatprep.subr.bf16.mxu1 %v4847_v25  ;;  %v4875_v60 = vld [vmem:[#allocation9 + $0x628] ss:$16 sps:$4 sm:$0xff]   ;;  %v4880_v25 = vld [vmem:[#allocation9 + $0x644] ss:$16 sps:$4 sm:$0xff]  }
 0x21d   :  { %3733 = vmatpush1.bf16.msra.mxu0 %v4842_v61  ;;  %3905 = vmatpush1.bf16.msra.mxu1 %v4845_v63  ;;  %v4883_v61 = vld [vmem:[#allocation9 + $0x64c] ss:$16 sps:$4 sm:$0xff]   ;;  %v4878_v63 = vld [vmem:[#allocation9 + $0x640] ss:$16 sps:$4 sm:$0xff]  }
 0x21e   :  { %3734 = vmatprep.subr.bf16.mxu0 %v4850_v0  ;;  %3906 = vmatprep.subr.bf16.mxu1 %v4853_v1  ;;  %v4881_v0 = vld [vmem:[#allocation9 + $0x648] ss:$16 sps:$4 sm:$0xff]   ;;  %v4886_v1 = vld [vmem:[#allocation9 + $0x664] ss:$16 sps:$4 sm:$0xff]  }
 0x221   :  { %3735 = vmatpush1.bf16.msra.mxu0 %v4848_v6  ;;  %3907 = vmatpush1.bf16.msra.mxu1 %v4851_v7  ;;  %v1913_v14 = vpop.f32.mrb[4].mxu0  ;;  %v1999_v19 = vpop.f32.mrb[4].mxu1  ;;  %v4895_v6 = vld [vmem:[#allocation9 + $0x68c] ss:$16 sps:$4 sm:$0xff]   ;;  %v4890_v7 = vld [vmem:[#allocation9 + $0x680] ss:$16 sps:$4 sm:$0xff]  }
 0x222   :  { %v4513_v18 = vadd.f32 %v1913_v14, %v363_v8  ;;  %v1915_v20 = vpop.f32.mrb[5].mxu0  ;;  %3736 = vmatprep.subr.bf16.mxu0 %v4856_v9  ;;  %3908 = vmatprep.subr.bf16.mxu1 %v4859_v10  ;;  %v4517_v22 = vadd.f32 %v1999_v19, %v371_v11  ;;  %v2001_v24 = vpop.f32.mrb[5].mxu1  ;;  %v4898_v9 = vld [vmem:[#allocation9 + $0x6a4] ss:$16 sps:$4 sm:$0xff]   ;;  %v4901_v10 = vld [vmem:[#allocation9 + $0x6ac] ss:$16 sps:$4 sm:$0xff]  }
 0x223   :  { %v4514_v23 = vadd.f32 %v1915_v20, %v367_v12  ;;  %v1917_v26 = vpop.f32.mrb[6].mxu0  ;;  %v4518_v27 = vadd.f32 %v2001_v24, %v375_v13  ;;  %v2003_v36 = vpop.f32.mrb[6].mxu1  ;;  %v4907_v14 = vld [vmem:[#allocation9 + $0x6cc] ss:$16 sps:$4 sm:$0xff]   ;;  %v4908_v20 = vld [vmem:[#allocation9 + $0x6e0] ss:$16 sps:$4 sm:$0xff]  }
 0x224   :  { %v4515_v29 = vadd.f32 %v1917_v26, %v363_v8  ;;  %v1919_v32 = vpop.f32.mrb[7].mxu0  ;;  %v4519_v37 = vadd.f32 %v2003_v36, %v371_v11  ;;  %v2005_v39 = vpop.f32.mrb[7].mxu1  ;;  %v2012_v28 = vmax.f32 %v4513_v18, 0.0  ;;  %v2014_v46 = vmax.f32 %v4517_v22, 0.0  ;;  %v4893_v8 = vld [vmem:[#allocation9 + $0x688] ss:$16 sps:$4 sm:$0xff]  }
 0x225   :  { %v4516_v38 = vadd.f32 %v1919_v32, %v367_v12  ;;  %3737 = vmatpush1.bf16.msra.mxu0 %v4854_v16  ;;  %3909 = vmatpush1.bf16.msra.mxu1 %v4857_v17  ;;  %v4520_v43 = vadd.f32 %v2005_v39, %v375_v13  ;;  %v2013_v47 = vmax.f32 %v4514_v23, 0.0  ;;  %v2015_v50 = vmax.f32 %v4518_v27, 0.0  ;;  %v4896_v11 = vld [vmem:[#allocation9 + $0x6a0] ss:$16 sps:$4 sm:$0xff]   ;;  %v4899_v12 = vld [vmem:[#allocation9 + $0x6a8] ss:$16 sps:$4 sm:$0xff]  }
 0x226   :  { %v2020_v42 = vmax.f32 %v4515_v29, 0.0  ;;  %3738 = vmatprep.subr.bf16.mxu0 %v4862_v21  ;;  %3910 = vmatprep.subr.bf16.mxu1 %v4865_v62  ;;  %v2022_v48 = vmax.f32 %v4519_v37, 0.0  ;;  %v4904_v13 = vld [vmem:[#allocation9 + $0x6c4] ss:$16 sps:$4 sm:$0xff]   ;;  %v4902_v16 = vld [vmem:[#allocation9 + $0x6c0] ss:$16 sps:$4 sm:$0xff]  }
 0x227   :  { %v2021_v49 = vmax.f32 %v4516_v38, 0.0  ;;  %v2023_v15 = vmax.f32 %v4520_v43, 0.0  ;;  %v4905_v17 = vld [vmem:[#allocation9 + $0x6c8] ss:$16 sps:$4 sm:$0xff]   ;;  %v4910_v18 = vld [vmem:[#allocation9 + $0x6e4] ss:$16 sps:$4 sm:$0xff]  }
 0x228   :  { %v2060_v51 = vpack.c.bf16 %v2020_v42, %v2012_v28  ;;  %v5243_v52 = vpack.c.bf16 %v2022_v48, %v2014_v46  ;;  %v4913_v19 = vld [vmem:[#allocation9 + $0x6ec] ss:$16 sps:$4 sm:$0xff]   ;;  %v4911_v21 = vld [vmem:[#allocation9 + $0x6e8] ss:$16 sps:$4 sm:$0xff]   ;;  %v4916_v62 = vld [vmem:[#allocation9 + $0x704] ss:$16 sps:$4 sm:$0xff]  }
 0x229   :  { %v2061_v53 = vpack.c.bf16 %v2021_v49, %v2013_v47  ;;  %3739 = vmatpush1.bf16.msra.mxu0 %v4860_v40  ;;  %3911 = vmatpush1.bf16.msra.mxu1 %v4863_v41  ;;  %v2063_v56 = vpack.c.bf16 %v2023_v15, %v2015_v50  ;;  %v4919_v22 = vld [vmem:[#allocation9 + $0x70c] ss:$16 sps:$4 sm:$0xff]   ;;  %v4914_v23 = vld [vmem:[#allocation9 + $0x700] ss:$16 sps:$4 sm:$0xff]   ;;  %v4917_v24 = vld [vmem:[#allocation9 + $0x708] ss:$16 sps:$4 sm:$0xff]  }
 0x22a   :  { %3751 = vmatprep.subr.bf16.mxu0 %v4868_v44  ;;  %3923 = vmatprep.subr.bf16.mxu1 %v4871_v45  ;;  %v4922_v26 = vld [vmem:[#allocation9 + $0x724] ss:$16 sps:$4 sm:$0xff]   ;;  %v4925_v27 = vld [vmem:[#allocation9 + $0x72c] ss:$16 sps:$4 sm:$0xff]   ;;  %v4920_v29 = vld [vmem:[#allocation9 + $0x720] ss:$16 sps:$4 sm:$0xff]  }
 0x22b   :  { %3740 = vmatprep.mubr.bf16.mxu0 %v2061_v53  ;;  %3912 = vmatprep.mubr.bf16.mxu1 %v2061_v53  ;;  %v4923_v36 = vld [vmem:[#allocation9 + $0x728] ss:$16 sps:$4 sm:$0xff]   ;;  %v4928_v32 = vld [vmem:[#allocation9 + $0x744] ss:$16 sps:$4 sm:$0xff]   ;;  %v4931_v37 = vld [vmem:[#allocation9 + $0x74c] ss:$16 sps:$4 sm:$0xff]  }
 0x22c   :  { %3741 = vmatmul.mubr.bf16.vlgmr.msra.gmra.mrb[8].mxu0 %v2060_v51  ;;  %3913 = vmatmul.mubr.bf16.vlgmr.msra.gmra.mrb[8].mxu1 %v2060_v51  ;;  %v4926_v38 = vld [vmem:[#allocation9 + $0x740] ss:$16 sps:$4 sm:$0xff]   ;;  %v4929_v39 = vld [vmem:[#allocation9 + $0x748] ss:$16 sps:$4 sm:$0xff]   ;;  %v4934_v40 = vld [vmem:[#allocation9 + $0x764] ss:$16 sps:$4 sm:$0xff]  }
 0x22d   :  { %3752 = vmatpush1.bf16.msra.mxu0 %v4866_v54  ;;  %3924 = vmatpush1.bf16.msra.mxu1 %v4869_v55  ;;  %v4937_v41 = vld [vmem:[#allocation9 + $0x76c] ss:$16 sps:$4 sm:$0xff]   ;;  %v4932_v28 = vld [vmem:[#allocation9 + $0x760] ss:$16 sps:$4 sm:$0xff]   ;;  %v4935_v42 = vld [vmem:[#allocation9 + $0x768] ss:$16 sps:$4 sm:$0xff]  }
 0x22e   :  { %3783 = vmatprep.mubr.bf16.mxu0 %v2063_v56  ;;  %3955 = vmatprep.mubr.bf16.mxu1 %v2063_v56  ;;  %v4940_v43 = vld [vmem:[#allocation9 + $0x784] ss:$16 sps:$4 sm:$0xff]   ;;  %v4943_v44 = vld [vmem:[#allocation9 + $0x78c] ss:$16 sps:$4 sm:$0xff]   ;;  %v4938_v45 = vld [vmem:[#allocation9 + $0x780] ss:$16 sps:$4 sm:$0xff]  }
 0x22f   :  { %3753 = vmatprep.subr.bf16.mxu0 %v4874_v58  ;;  %3925 = vmatprep.subr.bf16.mxu1 %v4877_v57  ;;  %v4941_v46 = vld [vmem:[#allocation9 + $0x788] ss:$16 sps:$4 sm:$0xff]   ;;  %v4946_v47 = vld [vmem:[#allocation9 + $0x7a4] ss:$16 sps:$4 sm:$0xff]   ;;  %v4949_v48 = vld [vmem:[#allocation9 + $0x7ac] ss:$16 sps:$4 sm:$0xff]  }
 0x230   :  { %v4944_v49 = vld [vmem:[#allocation9 + $0x7a0] ss:$16 sps:$4 sm:$0xff]   ;;  %v4947_v50 = vld [vmem:[#allocation9 + $0x7a8] ss:$16 sps:$4 sm:$0xff]   ;;  %v4952_v51 = vld [vmem:[#allocation9 + $0x7c4] ss:$16 sps:$4 sm:$0xff]  }
 0x231   :  { %3754 = vmatpush1.bf16.msra.mxu0 %v4872_v59  ;;  %3926 = vmatpush1.bf16.msra.mxu1 %v4875_v60  ;;  %v4955_v15 = vld [vmem:[#allocation9 + $0x7cc] ss:$16 sps:$4 sm:$0xff]   ;;  %v4950_v53 = vld [vmem:[#allocation9 + $0x7c0] ss:$16 sps:$4 sm:$0xff]   ;;  %v4953_v54 = vld [vmem:[#allocation9 + $0x7c8] ss:$16 sps:$4 sm:$0xff]  }
 0x232   :  { %3755 = vmatprep.subr.bf16.mxu0 %v4880_v25  ;;  %3927 = vmatprep.subr.bf16.mxu1 %v4883_v61  ;;  %v4958_v55 = vld [vmem:[#allocation9 + $0x7e4] ss:$16 sps:$4 sm:$0xff]   ;;  %v4961_v56 = vld [vmem:[#allocation9 + $0x7ec] ss:$16 sps:$4 sm:$0xff]   ;;  %v4956_v58 = vld [vmem:[#allocation9 + $0x7e0] ss:$16 sps:$4 sm:$0xff]  }
 0x233   :  { %v4959_v57 = vld [vmem:[#allocation9 + $0x7e8] ss:$16 sps:$4 sm:$0xff]  }
 0x234   :  { %v2320_v59 = vld [vmem:[%s5277_s4] sm:$0xf]  ;;  %s3979_s4 = sshll.u32 %s5088_s19, 4  ;;  %s3980_s4 = int_to_ptr.vmem [resolvable:$true] %s3979_s4 }
 0x235   :  { %3756 = vmatpush1.bf16.msra.mxu0 %v4878_v63  ;;  %3928 = vmatpush1.bf16.msra.mxu1 %v4881_v0  ;;  %v2325_v60 = vrot.slane %v2320_v59, %v346_v31  ;;  %v2333_v25 = vrot.slane %v2320_v59, %v354_v33  ;;  %v2329_v61 = vrot.slane %v2320_v59, %v350_v34  ;;  %s5050_s20 = scalar_lea.vmem %s3980_s4, 1024  ;;  %p5055_p5 = scmp.lt.s32.totalorder %s3980_s4, %s3980_s4 }
 0x236   :  { %3757 = vmatprep.subr.bf16.mxu0 %v4886_v1  ;;  %3929 = vmatprep.subr.bf16.mxu1 %v4889_v2  ;;  %v2337_v63 = vrot.slane %v2320_v59, %v358_v35  ;;  %p5051_p4 = scmp.ne.s32.totalorder %s3980_s4, %s5050_s20  ;;  %p5056_p6 = scmp.lt.s32.totalorder %s5050_s20, %s5050_s20 }
 0x238   :  { %p5057_p7 = por %p5056_p6, %p5055_p5 }
 0x239   :  { %3758 = vmatpush1.bf16.msra.mxu0 %v4884_v3  ;;  %3930 = vmatpush1.bf16.msra.mxu1 %v4887_v4 }
 0x23a   :  { %3759 = vmatprep.subr.bf16.mxu0 %v4892_v5  ;;  %3931 = vmatprep.subr.bf16.mxu1 %v4895_v6  ;;  %p5058_p8 = pnand %p5057_p7, %p5051_p4 }
 0x23d   :  { %3760 = vmatpush1.bf16.msra.mxu0 %v4890_v7  ;;  %3932 = vmatpush1.bf16.msra.mxu1 %v4893_v8 }
 0x23e   :  { %3761 = vmatprep.subr.bf16.mxu0 %v4898_v9  ;;  %3933 = vmatprep.subr.bf16.mxu1 %v4901_v10 }
 0x241   :  { %3762 = vmatpush1.bf16.msra.mxu0 %v4896_v11  ;;  %3934 = vmatpush1.bf16.msra.mxu1 %v4899_v12 }
 0x242   :  { %3763 = vmatprep.subr.bf16.mxu0 %v4904_v13  ;;  %3935 = vmatprep.subr.bf16.mxu1 %v4907_v14 }
 0x245   :  { %3764 = vmatpush1.bf16.msra.mxu0 %v4902_v16  ;;  %3936 = vmatpush1.bf16.msra.mxu1 %v4905_v17 }
 0x246   :  { %3765 = vmatprep.subr.bf16.mxu0 %v4910_v18  ;;  %3937 = vmatprep.subr.bf16.mxu1 %v4913_v19 }
 0x249   :  { %3766 = vmatpush1.bf16.msra.mxu0 %v4908_v20  ;;  %3938 = vmatpush1.bf16.msra.mxu1 %v4911_v21 }
 0x24a   :  { %3767 = vmatprep.subr.bf16.mxu0 %v4916_v62  ;;  %3939 = vmatprep.subr.bf16.mxu1 %v4919_v22 }
 0x24d   :  { %3768 = vmatpush1.bf16.msra.mxu0 %v4914_v23  ;;  %3940 = vmatpush1.bf16.msra.mxu1 %v4917_v24 }
 0x24e   :  { %3769 = vmatprep.subr.bf16.mxu0 %v4922_v26  ;;  %3941 = vmatprep.subr.bf16.mxu1 %v4925_v27 }
 0x251   :  { %3770 = vmatpush1.bf16.msra.mxu0 %v4920_v29  ;;  %3942 = vmatpush1.bf16.msra.mxu1 %v4923_v36 }
 0x252   :  { %3771 = vmatprep.subr.bf16.mxu0 %v4928_v32  ;;  %3943 = vmatprep.subr.bf16.mxu1 %v4931_v37 }
 0x255   :  { %3772 = vmatpush1.bf16.msra.mxu0 %v4926_v38  ;;  %3944 = vmatpush1.bf16.msra.mxu1 %v4929_v39 }
 0x256   :  { %3773 = vmatprep.subr.bf16.mxu0 %v4934_v40  ;;  %3945 = vmatprep.subr.bf16.mxu1 %v4937_v41 }
 0x259   :  { %3774 = vmatpush1.bf16.msra.mxu0 %v4932_v28  ;;  %3946 = vmatpush1.bf16.msra.mxu1 %v4935_v42 }
 0x25a   :  { %3775 = vmatprep.subr.bf16.mxu0 %v4940_v43  ;;  %3947 = vmatprep.subr.bf16.mxu1 %v4943_v44 }
 0x25d   :  { %3776 = vmatpush1.bf16.msra.mxu0 %v4938_v45  ;;  %3948 = vmatpush1.bf16.msra.mxu1 %v4941_v46 }
 0x25e   :  { %3777 = vmatprep.subr.bf16.mxu0 %v4946_v47  ;;  %3949 = vmatprep.subr.bf16.mxu1 %v4949_v48 }
 0x261   :  { %3778 = vmatpush1.bf16.msra.mxu0 %v4944_v49  ;;  %3950 = vmatpush1.bf16.msra.mxu1 %v4947_v50 }
 0x262   :  { %3779 = vmatprep.subr.bf16.mxu0 %v4952_v51  ;;  %3951 = vmatprep.subr.bf16.mxu1 %v4955_v15 }
 0x265   :  { %3780 = vmatpush1.bf16.msra.mxu0 %v4950_v53  ;;  %3952 = vmatpush1.bf16.msra.mxu1 %v4953_v54 }
 0x266   :  { %3781 = vmatprep.subr.bf16.mxu0 %v4958_v55  ;;  %3953 = vmatprep.subr.bf16.mxu1 %v4961_v56 }
 0x269   :  { %3782 = vmatpush1.bf16.msra.mxu0 %v4956_v58  ;;  %3954 = vmatpush1.bf16.msra.mxu1 %v4959_v57 }
 0x26c   :  { %3784 = vmatmul.mubr.bf16.vlgmr.msra.gmra.mrb[8].mxu0 %v5243_v52  ;;  %3956 = vmatmul.mubr.bf16.vlgmr.msra.gmra.mrb[8].mxu1 %v5243_v52 }
 0x33f   :  { %v3785_v0 = vpop.f32.mrb[8].mxu0  ;;  %v3957_v1 = vpop.f32.mrb[8].mxu1 }
 0x340   :  { %v4521_v2 = vadd.f32 %v3785_v0, %v2325_v60  ;;  %v4525_v52 = vadd.f32 %v3957_v1, %v2333_v25  ;;  %v3787_v3 = vpop.f32.mrb[9].mxu0  ;;  %v3959_v4 = vpop.f32.mrb[9].mxu1 }
 0x341   :  { %v4522_v5 = vadd.f32 %v3787_v3, %v2329_v61  ;;  %v4526_v6 = vadd.f32 %v3959_v4, %v2337_v63  ;;  %v3789_v31 = vpop.f32.mrb[10].mxu0  ;;  %v3961_v7 = vpop.f32.mrb[10].mxu1 }
 0x342   :  { %3966 = vst [vmem:[#allocation11] sm:$0xff] %v4521_v2  ;;  %3968 = vst [vmem:[#allocation11 + $0x10] sm:$0xff] %v4525_v52  ;;  %v4523_v33 = vadd.f32 %v3789_v31, %v2325_v60  ;;  %v4527_v8 = vadd.f32 %v3961_v7, %v2333_v25  ;;  %v3791_v34 = vpop.f32.mrb[11].mxu0  ;;  %v3963_v9 = vpop.f32.mrb[11].mxu1 }
 0x343   :  { %3967 = vst [vmem:[#allocation11 + $0x8] sm:$0xff] %v4522_v5  ;;  %3969 = vst [vmem:[#allocation11 + $0x18] sm:$0xff] %v4526_v6  ;;  %v4524_v30 = vadd.f32 %v3791_v34, %v2329_v61  ;;  %v4528_v35 = vadd.f32 %v3963_v9, %v2337_v63 }
 0x344   :  { %3970 = vst [vmem:[#allocation11 + $0x20] sm:$0xff] %v4523_v33  ;;  %3972 = vst [vmem:[#allocation11 + $0x30] sm:$0xff] %v4527_v8 }
 0x345   :  { %3971 = vst [vmem:[#allocation11 + $0x28] sm:$0xff] %v4524_v30  ;;  %3973 = vst [vmem:[#allocation11 + $0x38] sm:$0xff] %v4528_v35 }
 0x346   :  { %5061 = shalt.err (!%p5058_p8)
}
 0x347   :  { %s5062_s24 = scalar_lea.hbm %s5278_s5, 1024 }
 0x348   :  { %p5063_p9 = scmp.ne.s32.totalorder %s5278_s5, %s5062_s24  ;;  %p5066_p10 = scmp.lt.u32.totalorder %s5062_s24, %s5278_s5 }
 0x34a   :  { %p5068_p11 = pnand %p5066_p10, %p5063_p9 }
 0x34c   :  { %5071 = shalt.err (!%p5068_p11)
}
 0x34d   :  { %3985 = dma.vmem_to_hbm [thread:$0]  %s3980_s4, 1024, %s5278_s5, [#allocation5], %s5082_s30, %s5082_s30, %s5083_s6  }
 0x34e   :  { %5078 = dma.done.wait [#allocation5], 1024  }
 0x34f   :  { %5079 = vsyncadd [#allocation5], 4294966272 }
 0x350   :  { %3989 = vsyncpa [#allocation4], 1 }
 0x351   :  { %3990 = vsyncpa [#allocation7], 1 }
 0x352   :  { %3991 = vsyncpa [#allocation10], 1 }
 0x353   :  { %3992 = vsyncpa [#allocation5], 1 }

</bundles_post_ra>
